<compile_context>
chip_gen: v5e
topology: v5e:2x2
jax: 0.10.0
libtpu: 0.0.40
codegen_flags: <defaults>
</compile_context>

<pallas_src>
import jax
import jax.numpy as jnp
from jax.experimental import pallas as pl
from jax.experimental.pallas import tpu as pltpu


COMPUTE_DTYPE = jnp.bfloat16      # MXU operand / intermediate activation dtype
MAX_GEMM_ROWS = 2048              # rows per grid step (double-buffered VMEM stays small)


def _largest_divisor_leq(n, cap):
    cap = max(1, min(n, cap))
    for d in range(cap, 0, -1):
        if n % d == 0:
            return d
    return 1


# ----------------------------------------------------------------------------
# Pallas kernels
# ----------------------------------------------------------------------------
def _conv_pool_relu_kernel(x00_ref, x01_ref, x10_ref, x11_ref, w_ref, b_ref, o_ref):
    """o = relu(max_over_taps(x_tap @ w) + b).

    Each x_tap holds the im2col rows of one position of the 2x2 pool window,
    so the elementwise max of the four partial GEMMs *is* the max-pool.
    MXU runs in bf16 with f32 accumulation; epilogue is f32.
    """
    w = w_ref[...]
    acc = jnp.dot(x00_ref[...], w, preferred_element_type=jnp.float32)
    acc = jnp.maximum(acc, jnp.dot(x01_ref[...], w, preferred_element_type=jnp.float32))
    acc = jnp.maximum(acc, jnp.dot(x10_ref[...], w, preferred_element_type=jnp.float32))
    acc = jnp.maximum(acc, jnp.dot(x11_ref[...], w, preferred_element_type=jnp.float32))
    acc = jnp.maximum(acc + b_ref[...], 0.0)          # bias + relu, f32
    o_ref[...] = acc.astype(o_ref.dtype)


def _mlp_head_kernel(x_ref, w1_ref, b1_ref, w2_ref, b2_ref, o_ref):
    """o = log_softmax(relu(x @ w1 + b1) @ w2 + b2); matmuls bf16, epilogue f32."""
    h = jnp.dot(x_ref[...], w1_ref[...], preferred_element_type=jnp.float32)
    h = jnp.maximum(h + b1_ref[...], 0.0)
    z = jnp.dot(h.astype(w2_ref.dtype), w2_ref[...],
                preferred_element_type=jnp.float32)
    z = z + b2_ref[...]
    m = jnp.max(z, axis=-1, keepdims=True)
    s = z - m
    o_ref[...] = (s - jnp.log(jnp.sum(jnp.exp(s), axis=-1, keepdims=True))
                  ).astype(o_ref.dtype)


# ----------------------------------------------------------------------------
# Pallas wrappers
# ----------------------------------------------------------------------------
def conv_pool_relu(x, w_mat, b_row, k):
    """Fused VALID conv(k x k) + bias + 2x2 max-pool + relu.

    x:     [B, H, W, C]   (bf16, NHWC)
    w_mat: [k*k*C, Cout]  (bf16, HWIO flattened -> feature order (ki, kj, c))
    b_row: [1, Cout]      (f32)
    returns [B, (H-k+1)//2, (W-k+1)//2, Cout] in bf16.
    """
    B, H, W, C = x.shape
    K, Cout = w_mat.shape
    Ho, Wo = H - k + 1, W - k + 1
    Hp, Wp = Ho // 2, Wo // 2
    S = Hp * Wp                       # pooled positions per image
    M = B * S

    # Build one im2col matrix per pool tap (dh, dw); row order is (b, ph, pw),
    # feature order is (ki, kj, c) which matches the HWIO weight reshape.
    # TODO(synk): for very large batch, build the k*k*C patches inside the
    # kernel from an NHWC VMEM tile instead of materializing the im2col
    # expansion through HBM here.
    taps = []
    for dh in range(2):
        for dw in range(2):
            patches = [
                x[:, dh + ki: dh + ki + 2 * Hp: 2,
                     dw + kj: dw + kj + 2 * Wp: 2, :]
                for ki in range(k) for kj in range(k)
            ]
            cols = jnp.concatenate(patches, axis=-1)          # [B, Hp, Wp, K]
            taps.append(cols.reshape(M, K))

    # Tile rows by whole images so tile_m divides M and stays sublane-aligned
    # (S is a multiple of 8 for this network: 144 and 16).
    g = _largest_divisor_leq(B, max(1, MAX_GEMM_ROWS // S))
    tile_m = g * S
    grid = (M // tile_m,)

    tap_spec = pl.BlockSpec((tile_m, K), lambda i: (i, 0))
    out = pl.pallas_call(
        _conv_pool_relu_kernel,
        out_shape=jax.ShapeDtypeStruct((M, Cout), x.dtype),
        grid=grid,
        in_specs=[tap_spec, tap_spec, tap_spec, tap_spec,
                  pl.BlockSpec((K, Cout), lambda i: (0, 0)),
                  pl.BlockSpec((1, Cout), lambda i: (0, 0))],
        out_specs=pl.BlockSpec((tile_m, Cout), lambda i: (i, 0)),
        compiler_params=pltpu.CompilerParams(
            dimension_semantics=("parallel",)),
    )(*taps, w_mat, b_row)
    return out.reshape(B, Hp, Wp, Cout)


def mlp_head(x, w1, b1, w2, b2):
    """Fused fc1 + relu + fc2 + log_softmax.  x: [B, 320] bf16 -> [B, 10] f32."""
    B, K1 = x.shape
    _, N1 = w1.shape
    _, N2 = w2.shape
    if B % 8 == 0:
        tile_b = 8 * _largest_divisor_leq(B // 8, MAX_GEMM_ROWS // 8)
    else:
        tile_b = B                    # small batch: single block
    grid = (B // tile_b,)
    return pl.pallas_call(
        _mlp_head_kernel,
        out_shape=jax.ShapeDtypeStruct((B, N2), jnp.float32),
        grid=grid,
        in_specs=[pl.BlockSpec((tile_b, K1), lambda i: (i, 0)),
                  pl.BlockSpec((K1, N1), lambda i: (0, 0)),
                  pl.BlockSpec((1, N1), lambda i: (0, 0)),
                  pl.BlockSpec((N1, N2), lambda i: (0, 0)),
                  pl.BlockSpec((1, N2), lambda i: (0, 0))],
        out_specs=pl.BlockSpec((tile_b, N2), lambda i: (i, 0)),
        compiler_params=pltpu.CompilerParams(
            dimension_semantics=("parallel",)),
    )(x, w1, b1, w2, b2)


# ----------------------------------------------------------------------------
# Parameters (PyTorch layout) and kernel-ready preparation
# ----------------------------------------------------------------------------
def init_params(key):
    """Deterministic synthetic parameters matching SimpleMnist's shapes.

    Conv weights are HWIO (ki, kj, cin, cout); wfc1 rows are in PyTorch's
    NCHW-flatten order (c, h, w), exactly like the nn.Module.
    """
    ks = jax.random.split(key, 8)
    return {
        "w1": 0.1 * jax.random.normal(ks[0], (5, 5, 1, 10), jnp.float32),
        "b1": 0.1 * jax.random.normal(ks[1], (10,), jnp.float32),
        "w2": 0.1 * jax.random.normal(ks[2], (5, 5, 10, 20), jnp.float32),
        "b2": 0.1 * jax.random.normal(ks[3], (20,), jnp.float32),
        "wfc1": 0.1 * jax.random.normal(ks[4], (320, 50), jnp.float32),
        "bfc1": 0.1 * jax.random.normal(ks[5], (50,), jnp.float32),
        "wfc2": 0.1 * jax.random.normal(ks[6], (50, 10), jnp.float32),
        "bfc2": 0.1 * jax.random.normal(ks[7], (10,), jnp.float32),
    }


def prepare_params(p):
    """One-time host-side prep: flatten conv weights to GEMM matrices, cast MXU
    operands to bf16, and permute wfc1 rows from PyTorch's (c, h, w) flatten
    order to our NHWC (h, w, c) flatten order (removes the activation
    transpose from the forward pass)."""
    C2, Hp, Wp = 20, 4, 4
    hh, ww, cc = jnp.meshgrid(jnp.arange(Hp), jnp.arange(Wp), jnp.arange(C2),
                              indexing="ij")
    perm = (cc * (Hp * Wp) + hh * Wp + ww).reshape(-1)     # nhwc row -> nchw row
    return {
        "w1": p["w1"].reshape(25, 10).astype(COMPUTE_DTYPE),
        "b1": p["b1"].reshape(1, 10).astype(jnp.float32),
        "w2": p["w2"].reshape(250, 20).astype(COMPUTE_DTYPE),
        "b2": p["b2"].reshape(1, 20).astype(jnp.float32),
        "wfc1": p["wfc1"][perm, :].astype(COMPUTE_DTYPE),
        "bfc1": p["bfc1"].reshape(1, 50).astype(jnp.float32),
        "wfc2": p["wfc2"].astype(COMPUTE_DTYPE),
        "bfc2": p["bfc2"].reshape(1, 10).astype(jnp.float32),
    }


# ----------------------------------------------------------------------------
# Forward pass
# ----------------------------------------------------------------------------
def simple_mnist_forward(x_nchw, kp):
    """x_nchw: [B, 1, 28, 28] float32 -> log-probs [B, 10] float32."""
    x = jnp.transpose(x_nchw, (0, 2, 3, 1)).astype(COMPUTE_DTYPE)   # NHWC bf16
    B = x.shape[0]

    # conv1(1->10, k=5) + maxpool(2) + relu, fused            -> [B, 12, 12, 10]
    y = conv_pool_relu(x, kp["w1"], kp["b1"], k=5)
    # conv2(10->20, k=5) (+ Dropout2d identity) + pool + relu -> [B, 4, 4, 20]
    y = conv_pool_relu(y, kp["w2"], kp["b2"], k=5)

    # NHWC flatten; wfc1 rows were pre-permuted to match PyTorch's NCHW flatten.
    y = y.reshape(B, 320)

    # fc1 + relu (+ F.dropout identity) + fc2 + log_softmax, fused.
    return mlp_head(y, kp["wfc1"], kp["bfc1"], kp["wfc2"], kp["bfc2"])


# ----------------------------------------------------------------------------
# Pure-XLA reference (f32) for correctness checking
# ----------------------------------------------------------------------------
def reference_forward(x_nchw, p):
    dn = ("NCHW", "HWIO", "NCHW")
    y = jax.lax.conv_general_dilated(x_nchw, p["w1"], (1, 1), "VALID",
                                     dimension_numbers=dn)
    y = y + p["b1"].reshape(1, -1, 1, 1)
    y = jax.lax.reduce_window(y, -jnp.inf, jax.lax.max,
                              (1, 1, 2, 2), (1, 1, 2, 2), "VALID")
    y = jnp.maximum(y, 0.0)
    y = jax.lax.conv_general_dilated(y, p["w2"], (1, 1), "VALID",
                                     dimension_numbers=dn)
    y = y + p["b2"].reshape(1, -1, 1, 1)
    y = jax.lax.reduce_window(y, -jnp.inf, jax.lax.max,
                              (1, 1, 2, 2), (1, 1, 2, 2), "VALID")
    y = jnp.maximum(y, 0.0)
    y = y.reshape(y.shape[0], -1)                 # NCHW flatten -> (c, h, w)
    y = jnp.maximum(y @ p["wfc1"] + p["bfc1"], 0.0)
    y = y @ p["wfc2"] + p["bfc2"]
    return jax.nn.log_softmax(y, axis=-1)


if __name__ == "__main__":
    key = jax.random.PRNGKey(0)
    kx, kp_key = jax.random.split(key)

    # MNIST-shaped input (the 320-feature flatten requires 1x28x28 inputs).
    x = jax.random.normal(kx, (2, 1, 28, 28), jnp.float32)
    params = init_params(kp_key)
    kparams = prepare_params(params)

    fwd = jax.jit(simple_mnist_forward)
    out = jax.block_until_ready(fwd(x, kparams))

    assert out.shape == (2, 10), out.shape
    assert bool(jnp.all(jnp.isfinite(out)))
    # log_softmax sanity: each row's probabilities sum to 1.
    row_sums = jnp.sum(jnp.exp(out), axis=1)
    assert bool(jnp.all(jnp.abs(row_sums - 1.0) < 1e-3)), row_sums
    # Numerical check against an independent f32 XLA reference (bf16 MXU tol).
    ref = jax.jit(reference_forward)(x, params)
    max_err = float(jnp.max(jnp.abs(out - ref)))
    assert max_err < 0.25, max_err

    print("KERNEL_OK")
</pallas_src>

<mosaic_0001>
module attributes {stable_mosaic.version = 11 : i64} {
  func.func @_conv_pool_relu_kernel(%arg0: i32, %arg1: memref<288x25xbf16, #tpu.memory_space<vmem>>, %arg2: memref<288x25xbf16, #tpu.memory_space<vmem>>, %arg3: memref<288x25xbf16, #tpu.memory_space<vmem>>, %arg4: memref<288x25xbf16, #tpu.memory_space<vmem>>, %arg5: memref<25x10xbf16, #tpu.memory_space<vmem>>, %arg6: memref<1x10xf32, #tpu.memory_space<vmem>>, %arg7: memref<288x10xbf16, #tpu.memory_space<vmem>>) attributes {dimension_semantics = [#tpu.dimension_semantics<parallel>], iteration_bounds = array<i64: 1>, scalar_prefetch = 0 : i64, scratch_operands = 0 : i64, tpu.core_type = #tpu.core_type<tc>, window_params = [{transform_indices = @transform_0, window_bounds = array<i64: 288, 25>}, {transform_indices = @transform_1, window_bounds = array<i64: 288, 25>}, {transform_indices = @transform_2, window_bounds = array<i64: 288, 25>}, {transform_indices = @transform_3, window_bounds = array<i64: 288, 25>}, {pipeline_mode = #tpu.pipeline_mode<synchronous>, transform_indices = @transform_4, window_bounds = array<i64: 25, 10>}, {pipeline_mode = #tpu.pipeline_mode<synchronous>, transform_indices = @transform_5, window_bounds = array<i64: 1, 10>}, {transform_indices = @transform_6, window_bounds = array<i64: 288, 10>}]} {
    %c0 = arith.constant 0 : index
    %c0_0 = arith.constant 0 : index
    %0 = vector.load %arg5[%c0, %c0_0] : memref<25x10xbf16, #tpu.memory_space<vmem>>, vector<25x10xbf16>
    %c0_1 = arith.constant 0 : index
    %c0_2 = arith.constant 0 : index
    %1 = vector.load %arg1[%c0_1, %c0_2] : memref<288x25xbf16, #tpu.memory_space<vmem>>, vector<288x25xbf16>
    %cst = arith.constant dense<0.000000e+00> : vector<288x10xf32>
    %2 = tpu.matmul %1, %0, %cst {dimension_numbers = #tpu.dot_dimension_numbers<[1], [0], [0], [1], [0, 0, 1, 1], [], []>} : vector<288x25xbf16>, vector<25x10xbf16>, vector<288x10xf32> -> vector<288x10xf32>
    %c0_3 = arith.constant 0 : index
    %c0_4 = arith.constant 0 : index
    %3 = vector.load %arg2[%c0_3, %c0_4] : memref<288x25xbf16, #tpu.memory_space<vmem>>, vector<288x25xbf16>
    %cst_5 = arith.constant dense<0.000000e+00> : vector<288x10xf32>
    %4 = tpu.matmul %3, %0, %cst_5 {dimension_numbers = #tpu.dot_dimension_numbers<[1], [0], [0], [1], [0, 0, 1, 1], [], []>} : vector<288x25xbf16>, vector<25x10xbf16>, vector<288x10xf32> -> vector<288x10xf32>
    %5 = arith.maximumf %2, %4 : vector<288x10xf32>
    %c0_6 = arith.constant 0 : index
    %c0_7 = arith.constant 0 : index
    %6 = vector.load %arg3[%c0_6, %c0_7] : memref<288x25xbf16, #tpu.memory_space<vmem>>, vector<288x25xbf16>
    %cst_8 = arith.constant dense<0.000000e+00> : vector<288x10xf32>
    %7 = tpu.matmul %6, %0, %cst_8 {dimension_numbers = #tpu.dot_dimension_numbers<[1], [0], [0], [1], [0, 0, 1, 1], [], []>} : vector<288x25xbf16>, vector<25x10xbf16>, vector<288x10xf32> -> vector<288x10xf32>
    %8 = arith.maximumf %5, %7 : vector<288x10xf32>
    %c0_9 = arith.constant 0 : index
    %c0_10 = arith.constant 0 : index
    %9 = vector.load %arg4[%c0_9, %c0_10] : memref<288x25xbf16, #tpu.memory_space<vmem>>, vector<288x25xbf16>
    %cst_11 = arith.constant dense<0.000000e+00> : vector<288x10xf32>
    %10 = tpu.matmul %9, %0, %cst_11 {dimension_numbers = #tpu.dot_dimension_numbers<[1], [0], [0], [1], [0, 0, 1, 1], [], []>} : vector<288x25xbf16>, vector<25x10xbf16>, vector<288x10xf32> -> vector<288x10xf32>
    %11 = arith.maximumf %8, %10 : vector<288x10xf32>
    %c0_12 = arith.constant 0 : index
    %c0_13 = arith.constant 0 : index
    %12 = vector.load %arg6[%c0_12, %c0_13] : memref<1x10xf32, #tpu.memory_space<vmem>>, vector<1x10xf32>
    %13 = vector.broadcast %12 : vector<1x10xf32> to vector<288x10xf32>
    %14 = arith.addf %11, %13 : vector<288x10xf32>
    %cst_14 = arith.constant 0.000000e+00 : f32
    %15 = vector.broadcast %cst_14 : f32 to vector<288x10xf32>
    %16 = arith.maximumf %14, %15 : vector<288x10xf32>
    %17 = arith.truncf %16 : vector<288x10xf32> to vector<288x10xbf16>
    %c0_15 = arith.constant 0 : index
    %c0_16 = arith.constant 0 : index
    %18 = vector.load %arg7[%c0_15, %c0_16] : memref<288x10xbf16, #tpu.memory_space<vmem>>, vector<288x10xbf16>
    tpu.vector_store %arg7[%c0_15, %c0_16], %17 {strides = array<i32>} : memref<288x10xbf16, #tpu.memory_space<vmem>>, vector<288x10xbf16>,
    return
  }
  func.func @transform_0(%arg0: i32) -> (i32, i32) {
    %c0_i32 = arith.constant 0 : i32
    %c0_i32_0 = arith.constant 0 : i32
    return %arg0, %c0_i32 : i32, i32
  }
  func.func @transform_1(%arg0: i32) -> (i32, i32) {
    %c0_i32 = arith.constant 0 : i32
    %c0_i32_0 = arith.constant 0 : i32
    return %arg0, %c0_i32 : i32, i32
  }
  func.func @transform_2(%arg0: i32) -> (i32, i32) {
    %c0_i32 = arith.constant 0 : i32
    %c0_i32_0 = arith.constant 0 : i32
    return %arg0, %c0_i32 : i32, i32
  }
  func.func @transform_3(%arg0: i32) -> (i32, i32) {
    %c0_i32 = arith.constant 0 : i32
    %c0_i32_0 = arith.constant 0 : i32
    return %arg0, %c0_i32 : i32, i32
  }
  func.func @transform_4(%arg0: i32) -> (i32, i32) {
    %c0_i32 = arith.constant 0 : i32
    %c0_i32_0 = arith.constant 0 : i32
    %c0_i32_1 = arith.constant 0 : i32
    return %c0_i32, %c0_i32_0 : i32, i32
  }
  func.func @transform_5(%arg0: i32) -> (i32, i32) {
    %c0_i32 = arith.constant 0 : i32
    %c0_i32_0 = arith.constant 0 : i32
    %c0_i32_1 = arith.constant 0 : i32
    return %c0_i32, %c0_i32_0 : i32, i32
  }
  func.func @transform_6(%arg0: i32) -> (i32, i32) {
    %c0_i32 = arith.constant 0 : i32
    %c0_i32_0 = arith.constant 0 : i32
    return %arg0, %c0_i32 : i32, i32
  }
}

module attributes {stable_mosaic.version = 11 : i64} {
  func.func @_conv_pool_relu_kernel(%arg0: i32, %arg1: memref<32x250xbf16, #tpu.memory_space<vmem>>, %arg2: memref<32x250xbf16, #tpu.memory_space<vmem>>, %arg3: memref<32x250xbf16, #tpu.memory_space<vmem>>, %arg4: memref<32x250xbf16, #tpu.memory_space<vmem>>, %arg5: memref<250x20xbf16, #tpu.memory_space<vmem>>, %arg6: memref<1x20xf32, #tpu.memory_space<vmem>>, %arg7: memref<32x20xbf16, #tpu.memory_space<vmem>>) attributes {dimension_semantics = [#tpu.dimension_semantics<parallel>], iteration_bounds = array<i64: 1>, scalar_prefetch = 0 : i64, scratch_operands = 0 : i64, tpu.core_type = #tpu.core_type<tc>, window_params = [{transform_indices = @transform_0, window_bounds = array<i64: 32, 250>}, {transform_indices = @transform_1, window_bounds = array<i64: 32, 250>}, {transform_indices = @transform_2, window_bounds = array<i64: 32, 250>}, {transform_indices = @transform_3, window_bounds = array<i64: 32, 250>}, {pipeline_mode = #tpu.pipeline_mode<synchronous>, transform_indices = @transform_4, window_bounds = array<i64: 250, 20>}, {pipeline_mode = #tpu.pipeline_mode<synchronous>, transform_indices = @transform_5, window_bounds = array<i64: 1, 20>}, {transform_indices = @transform_6, window_bounds = array<i64: 32, 20>}]} {
    %c0 = arith.constant 0 : index
    %c0_0 = arith.constant 0 : index
    %0 = vector.load %arg5[%c0, %c0_0] : memref<250x20xbf16, #tpu.memory_space<vmem>>, vector<250x20xbf16>
    %c0_1 = arith.constant 0 : index
    %c0_2 = arith.constant 0 : index
    %1 = vector.load %arg1[%c0_1, %c0_2] : memref<32x250xbf16, #tpu.memory_space<vmem>>, vector<32x250xbf16>
    %cst = arith.constant dense<0.000000e+00> : vector<32x20xf32>
    %2 = tpu.matmul %1, %0, %cst {dimension_numbers = #tpu.dot_dimension_numbers<[1], [0], [0], [1], [0, 0, 1, 1], [], []>} : vector<32x250xbf16>, vector<250x20xbf16>, vector<32x20xf32> -> vector<32x20xf32>
    %c0_3 = arith.constant 0 : index
    %c0_4 = arith.constant 0 : index
    %3 = vector.load %arg2[%c0_3, %c0_4] : memref<32x250xbf16, #tpu.memory_space<vmem>>, vector<32x250xbf16>
    %cst_5 = arith.constant dense<0.000000e+00> : vector<32x20xf32>
    %4 = tpu.matmul %3, %0, %cst_5 {dimension_numbers = #tpu.dot_dimension_numbers<[1], [0], [0], [1], [0, 0, 1, 1], [], []>} : vector<32x250xbf16>, vector<250x20xbf16>, vector<32x20xf32> -> vector<32x20xf32>
    %5 = arith.maximumf %2, %4 : vector<32x20xf32>
    %c0_6 = arith.constant 0 : index
    %c0_7 = arith.constant 0 : index
    %6 = vector.load %arg3[%c0_6, %c0_7] : memref<32x250xbf16, #tpu.memory_space<vmem>>, vector<32x250xbf16>
    %cst_8 = arith.constant dense<0.000000e+00> : vector<32x20xf32>
    %7 = tpu.matmul %6, %0, %cst_8 {dimension_numbers = #tpu.dot_dimension_numbers<[1], [0], [0], [1], [0, 0, 1, 1], [], []>} : vector<32x250xbf16>, vector<250x20xbf16>, vector<32x20xf32> -> vector<32x20xf32>
    %8 = arith.maximumf %5, %7 : vector<32x20xf32>
    %c0_9 = arith.constant 0 : index
    %c0_10 = arith.constant 0 : index
    %9 = vector.load %arg4[%c0_9, %c0_10] : memref<32x250xbf16, #tpu.memory_space<vmem>>, vector<32x250xbf16>
    %cst_11 = arith.constant dense<0.000000e+00> : vector<32x20xf32>
    %10 = tpu.matmul %9, %0, %cst_11 {dimension_numbers = #tpu.dot_dimension_numbers<[1], [0], [0], [1], [0, 0, 1, 1], [], []>} : vector<32x250xbf16>, vector<250x20xbf16>, vector<32x20xf32> -> vector<32x20xf32>
    %11 = arith.maximumf %8, %10 : vector<32x20xf32>
    %c0_12 = arith.constant 0 : index
    %c0_13 = arith.constant 0 : index
    %12 = vector.load %arg6[%c0_12, %c0_13] : memref<1x20xf32, #tpu.memory_space<vmem>>, vector<1x20xf32>
    %13 = vector.broadcast %12 : vector<1x20xf32> to vector<32x20xf32>
    %14 = arith.addf %11, %13 : vector<32x20xf32>
    %cst_14 = arith.constant 0.000000e+00 : f32
    %15 = vector.broadcast %cst_14 : f32 to vector<32x20xf32>
    %16 = arith.maximumf %14, %15 : vector<32x20xf32>
    %17 = arith.truncf %16 : vector<32x20xf32> to vector<32x20xbf16>
    %c0_15 = arith.constant 0 : index
    %c0_16 = arith.constant 0 : index
    %18 = vector.load %arg7[%c0_15, %c0_16] : memref<32x20xbf16, #tpu.memory_space<vmem>>, vector<32x20xbf16>
    tpu.vector_store %arg7[%c0_15, %c0_16], %17 {strides = array<i32>} : memref<32x20xbf16, #tpu.memory_space<vmem>>, vector<32x20xbf16>,
    return
  }
  func.func @transform_0(%arg0: i32) -> (i32, i32) {
    %c0_i32 = arith.constant 0 : i32
    %c0_i32_0 = arith.constant 0 : i32
    return %arg0, %c0_i32 : i32, i32
  }
  func.func @transform_1(%arg0: i32) -> (i32, i32) {
    %c0_i32 = arith.constant 0 : i32
    %c0_i32_0 = arith.constant 0 : i32
    return %arg0, %c0_i32 : i32, i32
  }
  func.func @transform_2(%arg0: i32) -> (i32, i32) {
    %c0_i32 = arith.constant 0 : i32
    %c0_i32_0 = arith.constant 0 : i32
    return %arg0, %c0_i32 : i32, i32
  }
  func.func @transform_3(%arg0: i32) -> (i32, i32) {
    %c0_i32 = arith.constant 0 : i32
    %c0_i32_0 = arith.constant 0 : i32
    return %arg0, %c0_i32 : i32, i32
  }
  func.func @transform_4(%arg0: i32) -> (i32, i32) {
    %c0_i32 = arith.constant 0 : i32
    %c0_i32_0 = arith.constant 0 : i32
    %c0_i32_1 = arith.constant 0 : i32
    return %c0_i32, %c0_i32_0 : i32, i32
  }
  func.func @transform_5(%arg0: i32) -> (i32, i32) {
    %c0_i32 = arith.constant 0 : i32
    %c0_i32_0 = arith.constant 0 : i32
    %c0_i32_1 = arith.constant 0 : i32
    return %c0_i32, %c0_i32_0 : i32, i32
  }
  func.func @transform_6(%arg0: i32) -> (i32, i32) {
    %c0_i32 = arith.constant 0 : i32
    %c0_i32_0 = arith.constant 0 : i32
    return %arg0, %c0_i32 : i32, i32
  }
}

module attributes {stable_mosaic.version = 11 : i64} {
  func.func @_mlp_head_kernel(%arg0: i32, %arg1: memref<2x320xbf16, #tpu.memory_space<vmem>>, %arg2: memref<320x50xbf16, #tpu.memory_space<vmem>>, %arg3: memref<1x50xf32, #tpu.memory_space<vmem>>, %arg4: memref<50x10xbf16, #tpu.memory_space<vmem>>, %arg5: memref<1x10xf32, #tpu.memory_space<vmem>>, %arg6: memref<2x10xf32, #tpu.memory_space<vmem>>) attributes {dimension_semantics = [#tpu.dimension_semantics<parallel>], iteration_bounds = array<i64: 1>, scalar_prefetch = 0 : i64, scratch_operands = 0 : i64, tpu.core_type = #tpu.core_type<tc>, window_params = [{transform_indices = @transform_0, window_bounds = array<i64: 2, 320>}, {pipeline_mode = #tpu.pipeline_mode<synchronous>, transform_indices = @transform_1, window_bounds = array<i64: 320, 50>}, {pipeline_mode = #tpu.pipeline_mode<synchronous>, transform_indices = @transform_2, window_bounds = array<i64: 1, 50>}, {pipeline_mode = #tpu.pipeline_mode<synchronous>, transform_indices = @transform_3, window_bounds = array<i64: 50, 10>}, {pipeline_mode = #tpu.pipeline_mode<synchronous>, transform_indices = @transform_4, window_bounds = array<i64: 1, 10>}, {transform_indices = @transform_5, window_bounds = array<i64: 2, 10>}]} {
    %c0 = arith.constant 0 : index
    %c0_0 = arith.constant 0 : index
    %0 = vector.load %arg1[%c0, %c0_0] : memref<2x320xbf16, #tpu.memory_space<vmem>>, vector<2x320xbf16>
    %c0_1 = arith.constant 0 : index
    %c0_2 = arith.constant 0 : index
    %1 = vector.load %arg2[%c0_1, %c0_2] : memref<320x50xbf16, #tpu.memory_space<vmem>>, vector<320x50xbf16>
    %cst = arith.constant dense<0.000000e+00> : vector<2x50xf32>
    %2 = tpu.matmul %0, %1, %cst {dimension_numbers = #tpu.dot_dimension_numbers<[1], [0], [0], [1], [0, 0, 1, 1], [], []>} : vector<2x320xbf16>, vector<320x50xbf16>, vector<2x50xf32> -> vector<2x50xf32>
    %c0_3 = arith.constant 0 : index
    %c0_4 = arith.constant 0 : index
    %3 = vector.load %arg3[%c0_3, %c0_4] : memref<1x50xf32, #tpu.memory_space<vmem>>, vector<1x50xf32>
    %4 = vector.broadcast %3 : vector<1x50xf32> to vector<2x50xf32>
    %5 = arith.addf %2, %4 : vector<2x50xf32>
    %cst_5 = arith.constant 0.000000e+00 : f32
    %6 = vector.broadcast %cst_5 : f32 to vector<2x50xf32>
    %7 = arith.maximumf %5, %6 : vector<2x50xf32>
    %8 = arith.truncf %7 : vector<2x50xf32> to vector<2x50xbf16>
    %c0_6 = arith.constant 0 : index
    %c0_7 = arith.constant 0 : index
    %9 = vector.load %arg4[%c0_6, %c0_7] : memref<50x10xbf16, #tpu.memory_space<vmem>>, vector<50x10xbf16>
    %cst_8 = arith.constant dense<0.000000e+00> : vector<2x10xf32>
    %10 = tpu.matmul %8, %9, %cst_8 {dimension_numbers = #tpu.dot_dimension_numbers<[1], [0], [0], [1], [0, 0, 1, 1], [], []>} : vector<2x50xbf16>, vector<50x10xbf16>, vector<2x10xf32> -> vector<2x10xf32>
    %c0_9 = arith.constant 0 : index
    %c0_10 = arith.constant 0 : index
    %11 = vector.load %arg5[%c0_9, %c0_10] : memref<1x10xf32, #tpu.memory_space<vmem>>, vector<1x10xf32>
    %12 = vector.broadcast %11 : vector<1x10xf32> to vector<2x10xf32>
    %13 = arith.addf %10, %12 : vector<2x10xf32>
    %cst_11 = arith.constant dense<0xFF800000> : vector<2xf32>
    %14 = vector.multi_reduction <maximumf>, %13, %cst_11 [1] : vector<2x10xf32> to vector<2xf32>
    %15 = vector.shape_cast %14 : vector<2xf32> to vector<2x1xf32>
    %16 = vector.broadcast %15 : vector<2x1xf32> to vector<2x10xf32>
    %17 = arith.subf %13, %16 : vector<2x10xf32>
    %18 = math.exp %17 : vector<2x10xf32>
    %cst_12 = arith.constant dense<0.000000e+00> : vector<2xf32>
    %19 = vector.multi_reduction <add>, %18, %cst_12 [1] : vector<2x10xf32> to vector<2xf32>
    %20 = vector.shape_cast %19 : vector<2xf32> to vector<2x1xf32>
    %21 = math.log %20 : vector<2x1xf32>
    %22 = vector.broadcast %21 : vector<2x1xf32> to vector<2x10xf32>
    %23 = arith.subf %17, %22 : vector<2x10xf32>
    %c0_13 = arith.constant 0 : index
    %c0_14 = arith.constant 0 : index
    %24 = vector.load %arg6[%c0_13, %c0_14] : memref<2x10xf32, #tpu.memory_space<vmem>>, vector<2x10xf32>
    tpu.vector_store %arg6[%c0_13, %c0_14], %23 {strides = array<i32>} : memref<2x10xf32, #tpu.memory_space<vmem>>, vector<2x10xf32>,
    return
  }
  func.func @transform_0(%arg0: i32) -> (i32, i32) {
    %c0_i32 = arith.constant 0 : i32
    %c0_i32_0 = arith.constant 0 : i32
    return %arg0, %c0_i32 : i32, i32
  }
  func.func @transform_1(%arg0: i32) -> (i32, i32) {
    %c0_i32 = arith.constant 0 : i32
    %c0_i32_0 = arith.constant 0 : i32
    %c0_i32_1 = arith.constant 0 : i32
    return %c0_i32, %c0_i32_0 : i32, i32
  }
  func.func @transform_2(%arg0: i32) -> (i32, i32) {
    %c0_i32 = arith.constant 0 : i32
    %c0_i32_0 = arith.constant 0 : i32
    %c0_i32_1 = arith.constant 0 : i32
    return %c0_i32, %c0_i32_0 : i32, i32
  }
  func.func @transform_3(%arg0: i32) -> (i32, i32) {
    %c0_i32 = arith.constant 0 : i32
    %c0_i32_0 = arith.constant 0 : i32
    %c0_i32_1 = arith.constant 0 : i32
    return %c0_i32, %c0_i32_0 : i32, i32
  }
  func.func @transform_4(%arg0: i32) -> (i32, i32) {
    %c0_i32 = arith.constant 0 : i32
    %c0_i32_0 = arith.constant 0 : i32
    %c0_i32_1 = arith.constant 0 : i32
    return %c0_i32, %c0_i32_0 : i32, i32
  }
  func.func @transform_5(%arg0: i32) -> (i32, i32) {
    %c0_i32 = arith.constant 0 : i32
    %c0_i32_0 = arith.constant 0 : i32
    return %arg0, %c0_i32 : i32, i32
  }
}

</mosaic_0001>

<bundles_post_ra>
// kernel: simple_mnist_forward.3
= control target key start
LH: loop header
LB: loop body
LE: loop exit
PB: predicated region body
PF: predicated region fallthrough
CT: control target
= control target key end

     0   :  { %vm220_vm0 = vcmask 1043456   ;;  %vm221_vm1 = vcmask 1044480   ;;  %v1868_v2 = vmov 65535   ;;  %vm165_vm2 = vcmask 203776   ;;  %s2386_s4 = inlined_call_operand.vmem [shape: bf16[25,10], index: 4, kind: input, shape index: {}]   ;;  %s2387_s0 = inlined_call_operand.vmem [shape: bf16[288,25], index: 0, kind: input, shape index: {}]   ;;  %s2388_s1 = inlined_call_operand.vmem [shape: bf16[288,25], index: 1, kind: input, shape index: {}]   ;;  %s2389_s2 = inlined_call_operand.vmem [shape: bf16[288,25], index: 2, kind: input, shape index: {}]   ;;  %s2390_s3 = inlined_call_operand.vmem [shape: bf16[288,25], index: 3, kind: input, shape index: {}]   ;;  %s2391_s5 = inlined_call_operand.vmem [shape: f32[1,10], index: 5, kind: input, shape index: {}]   ;;  %s2392_s6 = inlined_call_operand.vmem [shape: bf16[288,10], index: 6, kind: output, shape index: {}]  }
   0x1   :  { %v1502_v0 = vld [vmem:[%s2386_s4 + $0x8] sm:$0xf]  ;;  %v1793_v1 = vld [vmem:[%s2386_s4 + $0x8] sm:$0x10]  ;;  %v222_v3 = vsel %vm220_vm0, 4294967295, %v1868_v2  ;;  %v1792_v7 = vld [vmem:[%s2386_s4] sm:$0xff] }
   0x2   :  { %v1503_v4 = vor.u32 %v1793_v1, %v1502_v0  ;;  %v223_v5 = vsel %vm221_vm1, %v222_v3, 0  ;;  %v1794_v8 = vld [vmem:[%s2387_s0] sm:$0xff]  ;;  %v1795_v12 = vld [vmem:[%s2387_s0 + $0x8] sm:$0xff]  ;;  %v1796_v16 = vld [vmem:[%s2387_s0 + $0x10] sm:$0xff]  ;;  %vm1383_vm3 = vcmask 76800  }
   0x3   :  { %v1812_v9 = vld [vmem:[%s2388_s1] sm:$0xff]  ;;  %v1813_v13 = vld [vmem:[%s2388_s1 + $0x8] sm:$0xff]  ;;  %v1814_v17 = vld [vmem:[%s2388_s1 + $0x10] sm:$0xff] }
   0x4   :  { %v225_v6 = vand.u32 %v1503_v4, %v223_v5  ;;  %v1830_v10 = vld [vmem:[%s2389_s2] sm:$0xff]  ;;  %v1831_v14 = vld [vmem:[%s2389_s2 + $0x8] sm:$0xff]  ;;  %v1832_v18 = vld [vmem:[%s2389_s2 + $0x10] sm:$0xff] }
   0x5   :  { %v1848_v11 = vld [vmem:[%s2390_s3] sm:$0xff]  ;;  %v1849_v15 = vld [vmem:[%s2390_s3 + $0x8] sm:$0xff]  ;;  %v1850_v19 = vld [vmem:[%s2390_s3 + $0x10] sm:$0xff] }
   0x6   :  { %233 = vmatpush.bf16.msra.mxu0 %v225_v6  ;;  %512 = vmatpush.bf16.msra.mxu1 %v225_v6  ;;  %v1797_v20 = vld [vmem:[%s2387_s0 + $0x18] sm:$0xff]  ;;  %v1798_v24 = vld [vmem:[%s2387_s0 + $0x20] sm:$0xff]  ;;  %v1799_v28 = vld [vmem:[%s2387_s0 + $0x28] sm:$0xff] }
   0x7   :  { %827 = vmatpush.bf16.msra.mxu2 %v225_v6  ;;  %1142 = vmatpush.bf16.msra.mxu3 %v225_v6  ;;  %v1815_v21 = vld [vmem:[%s2388_s1 + $0x18] sm:$0xff]  ;;  %v1816_v25 = vld [vmem:[%s2388_s1 + $0x20] sm:$0xff]  ;;  %v1817_v29 = vld [vmem:[%s2388_s1 + $0x28] sm:$0xff] }
   0x8   :  { %v1833_v22 = vld [vmem:[%s2389_s2 + $0x18] sm:$0xff]  ;;  %v1834_v26 = vld [vmem:[%s2389_s2 + $0x20] sm:$0xff]  ;;  %v1835_v30 = vld [vmem:[%s2389_s2 + $0x28] sm:$0xff] }
   0x9   :  { %v1851_v23 = vld [vmem:[%s2390_s3 + $0x18] sm:$0xff]  ;;  %v1852_v27 = vld [vmem:[%s2390_s3 + $0x20] sm:$0xff]  ;;  %v1853_v31 = vld [vmem:[%s2390_s3 + $0x28] sm:$0xff] }
   0xa   :  { %234 = vmatpush.bf16.msra.mxu0 %v1792_v7  ;;  %513 = vmatpush.bf16.msra.mxu1 %v1792_v7  ;;  %v1800_v32 = vld [vmem:[%s2387_s0 + $0x30] sm:$0xff]  ;;  %v1801_v36 = vld [vmem:[%s2387_s0 + $0x38] sm:$0xff]  ;;  %v1802_v40 = vld [vmem:[%s2387_s0 + $0x40] sm:$0xff] }
   0xb   :  { %828 = vmatpush.bf16.msra.mxu2 %v1792_v7  ;;  %1143 = vmatpush.bf16.msra.mxu3 %v1792_v7  ;;  %v1818_v33 = vld [vmem:[%s2388_s1 + $0x30] sm:$0xff]  ;;  %v1819_v37 = vld [vmem:[%s2388_s1 + $0x38] sm:$0xff]  ;;  %v1820_v41 = vld [vmem:[%s2388_s1 + $0x40] sm:$0xff] }
   0xc   :  { %v1836_v34 = vld [vmem:[%s2389_s2 + $0x30] sm:$0xff]  ;;  %v1837_v38 = vld [vmem:[%s2389_s2 + $0x38] sm:$0xff]  ;;  %v1838_v44 = vld [vmem:[%s2389_s2 + $0x40] sm:$0xff] }
   0xd   :  { %1504 = vmatmul.msk.bf16.vlgmr.msra.gmra.mxu0 %vm165_vm2, %v1794_v8  ;;  %1594 = vmatmul.msk.bf16.vlgmr.msra.gmra.mxu1 %vm165_vm2, %v1812_v9  ;;  %v1854_v35 = vld [vmem:[%s2390_s3 + $0x30] sm:$0xff]  ;;  %v1855_v39 = vld [vmem:[%s2390_s3 + $0x38] sm:$0xff]  ;;  %v1856_v45 = vld [vmem:[%s2390_s3 + $0x40] sm:$0xff] }
   0xe   :  { %1684 = vmatmul.msk.bf16.vlgmr.msra.gmra.mxu2 %vm165_vm2, %v1830_v10  ;;  %1774 = vmatmul.msk.bf16.vlgmr.msra.gmra.mxu3 %vm165_vm2, %v1848_v11  ;;  %v2060_v50 = vld [vmem:[%s2391_s5] ss:$0 sm:$0xff]  ;;  %v1803_v59 = vld [vmem:[%s2387_s0 + $0x48] sm:$0xff] }
   0xf   :  { %v1821_v60 = vld [vmem:[%s2388_s1 + $0x48] sm:$0xff] }
  0x10   :  { %v1839_v1 = vld [vmem:[%s2389_s2 + $0x48] sm:$0xff] }
  0x11   :  { %v1857_v2 = vld [vmem:[%s2390_s3 + $0x48] sm:$0xff] }
  0x1d   :  { %1505 = vmatmul.msk.bf16.gmra.mxu0 %vm165_vm2, %v1795_v12  ;;  %1595 = vmatmul.msk.bf16.gmra.mxu1 %vm165_vm2, %v1813_v13 }
  0x1e   :  { %1685 = vmatmul.msk.bf16.gmra.mxu2 %vm165_vm2, %v1831_v14  ;;  %1775 = vmatmul.msk.bf16.gmra.mxu3 %vm165_vm2, %v1849_v15 }
  0x2d   :  { %1506 = vmatmul.msk.bf16.gmra.mxu0 %vm165_vm2, %v1796_v16  ;;  %1596 = vmatmul.msk.bf16.gmra.mxu1 %vm165_vm2, %v1814_v17 }
  0x2e   :  { %1686 = vmatmul.msk.bf16.gmra.mxu2 %vm165_vm2, %v1832_v18  ;;  %1776 = vmatmul.msk.bf16.gmra.mxu3 %vm165_vm2, %v1850_v19  ;;  %v1804_v19 = vld [vmem:[%s2387_s0 + $0x50] sm:$0xff] }
  0x3d   :  { %1507 = vmatmul.msk.bf16.gmra.mxu0 %vm165_vm2, %v1797_v20  ;;  %1597 = vmatmul.msk.bf16.gmra.mxu1 %vm165_vm2, %v1815_v21  ;;  %v1822_v20 = vld [vmem:[%s2388_s1 + $0x50] sm:$0xff] }
  0x3e   :  { %1687 = vmatmul.msk.bf16.gmra.mxu2 %vm165_vm2, %v1833_v22  ;;  %1777 = vmatmul.msk.bf16.gmra.mxu3 %vm165_vm2, %v1851_v23 }
  0x4d   :  { %1508 = vmatmul.msk.bf16.gmra.mxu0 %vm165_vm2, %v1798_v24  ;;  %1598 = vmatmul.msk.bf16.gmra.mxu1 %vm165_vm2, %v1816_v25  ;;  %v1840_v25 = vld [vmem:[%s2389_s2 + $0x50] sm:$0xff] }
  0x4e   :  { %1688 = vmatmul.msk.bf16.gmra.mxu2 %vm165_vm2, %v1834_v26  ;;  %1778 = vmatmul.msk.bf16.gmra.mxu3 %vm165_vm2, %v1852_v27  ;;  %v1858_v26 = vld [vmem:[%s2390_s3 + $0x50] sm:$0xff] }
  0x5d   :  { %1509 = vmatmul.msk.bf16.gmra.mxu0 %vm165_vm2, %v1799_v28  ;;  %1599 = vmatmul.msk.bf16.gmra.mxu1 %vm165_vm2, %v1817_v29 }
  0x5e   :  { %1689 = vmatmul.msk.bf16.gmra.mxu2 %vm165_vm2, %v1835_v30  ;;  %1779 = vmatmul.msk.bf16.gmra.mxu3 %vm165_vm2, %v1853_v31 }
  0x6d   :  { %1510 = vmatmul.msk.bf16.gmra.mxu0 %vm165_vm2, %v1800_v32  ;;  %1600 = vmatmul.msk.bf16.gmra.mxu1 %vm165_vm2, %v1818_v33 }
  0x6e   :  { %1690 = vmatmul.msk.bf16.gmra.mxu2 %vm165_vm2, %v1836_v34  ;;  %1780 = vmatmul.msk.bf16.gmra.mxu3 %vm165_vm2, %v1854_v35 }
  0x7d   :  { %1511 = vmatmul.msk.bf16.gmra.mxu0 %vm165_vm2, %v1801_v36  ;;  %1601 = vmatmul.msk.bf16.gmra.mxu1 %vm165_vm2, %v1819_v37 }
  0x7e   :  { %1691 = vmatmul.msk.bf16.gmra.mxu2 %vm165_vm2, %v1837_v38  ;;  %1781 = vmatmul.msk.bf16.gmra.mxu3 %vm165_vm2, %v1855_v39 }
  0x8a   :  { %v236_v42 = vpop.f32.mrf.mxu0  ;;  %v515_v43 = vpop.f32.mrf.mxu1 }
  0x8b   :  { %v605_v46 = vmax.f32 %v236_v42, %v515_v43  ;;  %v1805_v43 = vld [vmem:[%s2387_s0 + $0x58] sm:$0xff] }
  0x8d   :  { %1512 = vmatmul.msk.bf16.gmra.mxu0 %vm165_vm2, %v1802_v40  ;;  %1602 = vmatmul.msk.bf16.gmra.mxu1 %vm165_vm2, %v1820_v41 }
  0x8e   :  { %1692 = vmatmul.msk.bf16.gmra.mxu2 %vm165_vm2, %v1838_v44  ;;  %1782 = vmatmul.msk.bf16.gmra.mxu3 %vm165_vm2, %v1856_v45  ;;  %v1823_v44 = vld [vmem:[%s2388_s1 + $0x58] sm:$0xff] }
  0x91   :  { %v830_v47 = vpop.f32.mrf.mxu2  ;;  %v1145_v48 = vpop.f32.mrf.mxu3 }
  0x92   :  { %v920_v49 = vmax.f32 %v605_v46, %v830_v47  ;;  %v238_v51 = vpop.f32.mrf.mxu0  ;;  %v517_v52 = vpop.f32.mrf.mxu1 }
  0x93   :  { %v606_v56 = vmax.f32 %v238_v51, %v517_v52  ;;  %v1859_v51 = vld [vmem:[%s2390_s3 + $0x58] sm:$0xff] }
  0x94   :  { %v1235_v53 = vmax.f32 %v920_v49, %v1145_v48  ;;  %v1841_v49 = vld [vmem:[%s2389_s2 + $0x58] sm:$0xff] }
  0x96   :  { %v1275_v54 = vadd.f32 %v2060_v50, %v1235_v53 }
  0x98   :  { %v1311_v55 = vmax.f32 %v1275_v54, 0.0 }
  0x99   :  { %v832_v57 = vpop.f32.mrf.mxu2  ;;  %v1147_v58 = vpop.f32.mrf.mxu3 }
  0x9a   :  { %v1347_v61 = vpack.c.bf16 %v1311_v55, %v1311_v55  ;;  %v921_v62 = vmax.f32 %v606_v56, %v832_v57  ;;  %v241_v63 = vpop.f32.mrf.mxu0  ;;  %v520_v0 = vpop.f32.mrf.mxu1 }
  0x9b   :  { %v607_v5 = vmax.f32 %v241_v63, %v520_v0 }
  0x9c   :  { %1384 = vst.msk [vmem:[%s2392_s6] sm:$0xf] %vm1383_vm3, %v1347_v61  ;;  %v1236_v3 = vmax.f32 %v921_v62, %v1147_v58 }
  0x9d   :  { %1513 = vmatmul.msk.bf16.gmra.mxu0 %vm165_vm2, %v1803_v59  ;;  %1603 = vmatmul.msk.bf16.gmra.mxu1 %vm165_vm2, %v1821_v60 }
  0x9e   :  { %v1276_v4 = vadd.f32 %v2060_v50, %v1236_v3  ;;  %1693 = vmatmul.msk.bf16.gmra.mxu2 %vm165_vm2, %v1839_v1  ;;  %1783 = vmatmul.msk.bf16.gmra.mxu3 %vm165_vm2, %v1857_v2 }
  0xa0   :  { %v1312_v6 = vmax.f32 %v1276_v4, 0.0  ;;  %v1806_v4 = vld [vmem:[%s2387_s0 + $0x60] sm:$0xff] }
  0xa1   :  { %v835_v7 = vpop.f32.mrf.mxu2  ;;  %v1150_v8 = vpop.f32.mrf.mxu3 }
  0xa2   :  { %v1348_v9 = vpack.c.bf16 %v1312_v6, %v1312_v6  ;;  %v922_v10 = vmax.f32 %v607_v5, %v835_v7  ;;  %v243_v11 = vpop.f32.mrf.mxu0  ;;  %v522_v12 = vpop.f32.mrf.mxu1  ;;  %v1824_v5 = vld [vmem:[%s2388_s1 + $0x60] sm:$0xff] }
  0xa3   :  { %v608_v16 = vmax.f32 %v243_v11, %v522_v12  ;;  %v1860_v11 = vld [vmem:[%s2390_s3 + $0x60] sm:$0xff] }
  0xa4   :  { %1385 = vst.msk [vmem:[%s2392_s6 + $0x4] sm:$0xf] %vm1383_vm3, %v1348_v9  ;;  %v1237_v13 = vmax.f32 %v922_v10, %v1150_v8  ;;  %v1842_v10 = vld [vmem:[%s2389_s2 + $0x60] sm:$0xff] }
  0xa6   :  { %v1277_v14 = vadd.f32 %v2060_v50, %v1237_v13 }
  0xa8   :  { %v1313_v15 = vmax.f32 %v1277_v14, 0.0 }
  0xa9   :  { %v837_v17 = vpop.f32.mrf.mxu2  ;;  %v1152_v18 = vpop.f32.mrf.mxu3 }
  0xaa   :  { %v1349_v21 = vpack.c.bf16 %v1313_v15, %v1313_v15  ;;  %v923_v22 = vmax.f32 %v608_v16, %v837_v17  ;;  %v246_v23 = vpop.f32.mrf.mxu0  ;;  %v525_v24 = vpop.f32.mrf.mxu1 }
  0xab   :  { %v609_v29 = vmax.f32 %v246_v23, %v525_v24 }
  0xac   :  { %1386 = vst.msk [vmem:[%s2392_s6 + $0x8] sm:$0xf] %vm1383_vm3, %v1349_v21  ;;  %v1238_v27 = vmax.f32 %v923_v22, %v1152_v18 }
  0xad   :  { %1514 = vmatmul.msk.bf16.gmra.mxu0 %vm165_vm2, %v1804_v19  ;;  %1604 = vmatmul.msk.bf16.gmra.mxu1 %vm165_vm2, %v1822_v20 }
  0xae   :  { %v1278_v28 = vadd.f32 %v2060_v50, %v1238_v27  ;;  %1694 = vmatmul.msk.bf16.gmra.mxu2 %vm165_vm2, %v1840_v25  ;;  %1784 = vmatmul.msk.bf16.gmra.mxu3 %vm165_vm2, %v1858_v26 }
  0xb0   :  { %v1314_v30 = vmax.f32 %v1278_v28, 0.0  ;;  %v1807_v28 = vld [vmem:[%s2387_s0 + $0x68] sm:$0xff] }
  0xb1   :  { %v840_v31 = vpop.f32.mrf.mxu2  ;;  %v1155_v32 = vpop.f32.mrf.mxu3 }
  0xb2   :  { %v1350_v33 = vpack.c.bf16 %v1314_v30, %v1314_v30  ;;  %v924_v34 = vmax.f32 %v609_v29, %v840_v31  ;;  %v248_v35 = vpop.f32.mrf.mxu0  ;;  %v527_v36 = vpop.f32.mrf.mxu1  ;;  %v1825_v29 = vld [vmem:[%s2388_s1 + $0x68] sm:$0xff] }
  0xb3   :  { %v610_v40 = vmax.f32 %v248_v35, %v527_v36  ;;  %v1861_v35 = vld [vmem:[%s2390_s3 + $0x68] sm:$0xff] }
  0xb4   :  { %1387 = vst.msk [vmem:[%s2392_s6 + $0xc] sm:$0xf] %vm1383_vm3, %v1350_v33  ;;  %v1239_v37 = vmax.f32 %v924_v34, %v1155_v32  ;;  %v1843_v34 = vld [vmem:[%s2389_s2 + $0x68] sm:$0xff] }
  0xb6   :  { %v1279_v38 = vadd.f32 %v2060_v50, %v1239_v37 }
  0xb8   :  { %v1315_v39 = vmax.f32 %v1279_v38, 0.0 }
  0xb9   :  { %v842_v41 = vpop.f32.mrf.mxu2  ;;  %v1157_v42 = vpop.f32.mrf.mxu3 }
  0xba   :  { %v1351_v45 = vpack.c.bf16 %v1315_v39, %v1315_v39  ;;  %v925_v46 = vmax.f32 %v610_v40, %v842_v41  ;;  %v251_v47 = vpop.f32.mrf.mxu0  ;;  %v530_v48 = vpop.f32.mrf.mxu1 }
  0xbb   :  { %v611_v54 = vmax.f32 %v251_v47, %v530_v48 }
  0xbc   :  { %1388 = vst.msk [vmem:[%s2392_s6 + $0x10] sm:$0xf] %vm1383_vm3, %v1351_v45  ;;  %v1240_v52 = vmax.f32 %v925_v46, %v1157_v42 }
  0xbd   :  { %1515 = vmatmul.msk.bf16.gmra.mxu0 %vm165_vm2, %v1805_v43  ;;  %1605 = vmatmul.msk.bf16.gmra.mxu1 %vm165_vm2, %v1823_v44 }
  0xbe   :  { %v1280_v53 = vadd.f32 %v2060_v50, %v1240_v52  ;;  %1695 = vmatmul.msk.bf16.gmra.mxu2 %vm165_vm2, %v1841_v49  ;;  %1785 = vmatmul.msk.bf16.gmra.mxu3 %vm165_vm2, %v1859_v51 }
  0xc0   :  { %v1316_v55 = vmax.f32 %v1280_v53, 0.0  ;;  %v1808_v53 = vld [vmem:[%s2387_s0 + $0x70] sm:$0xff] }
  0xc1   :  { %v845_v56 = vpop.f32.mrf.mxu2  ;;  %v1160_v57 = vpop.f32.mrf.mxu3 }
  0xc2   :  { %v1352_v58 = vpack.c.bf16 %v1316_v55, %v1316_v55  ;;  %v926_v59 = vmax.f32 %v611_v54, %v845_v56  ;;  %v253_v60 = vpop.f32.mrf.mxu0  ;;  %v532_v61 = vpop.f32.mrf.mxu1  ;;  %v1826_v54 = vld [vmem:[%s2388_s1 + $0x70] sm:$0xff] }
  0xc3   :  { %v612_v1 = vmax.f32 %v253_v60, %v532_v61  ;;  %v1862_v60 = vld [vmem:[%s2390_s3 + $0x70] sm:$0xff] }
  0xc4   :  { %1389 = vst.msk [vmem:[%s2392_s6 + $0x14] sm:$0xf] %vm1383_vm3, %v1352_v58  ;;  %v1241_v62 = vmax.f32 %v926_v59, %v1160_v57  ;;  %v1844_v59 = vld [vmem:[%s2389_s2 + $0x70] sm:$0xff] }
  0xc6   :  { %v1281_v63 = vadd.f32 %v2060_v50, %v1241_v62 }
  0xc8   :  { %v1317_v0 = vmax.f32 %v1281_v63, 0.0 }
  0xc9   :  { %v847_v2 = vpop.f32.mrf.mxu2  ;;  %v1162_v3 = vpop.f32.mrf.mxu3 }
  0xca   :  { %v1353_v6 = vpack.c.bf16 %v1317_v0, %v1317_v0  ;;  %v927_v7 = vmax.f32 %v612_v1, %v847_v2  ;;  %v256_v8 = vpop.f32.mrf.mxu0  ;;  %v535_v9 = vpop.f32.mrf.mxu1 }
  0xcb   :  { %v613_v14 = vmax.f32 %v256_v8, %v535_v9 }
  0xcc   :  { %1390 = vst.msk [vmem:[%s2392_s6 + $0x18] sm:$0xf] %vm1383_vm3, %v1353_v6  ;;  %v1242_v12 = vmax.f32 %v927_v7, %v1162_v3 }
  0xcd   :  { %1516 = vmatmul.msk.bf16.gmra.mxu0 %vm165_vm2, %v1806_v4  ;;  %1606 = vmatmul.msk.bf16.gmra.mxu1 %vm165_vm2, %v1824_v5 }
  0xce   :  { %v1282_v13 = vadd.f32 %v2060_v50, %v1242_v12  ;;  %1696 = vmatmul.msk.bf16.gmra.mxu2 %vm165_vm2, %v1842_v10  ;;  %1786 = vmatmul.msk.bf16.gmra.mxu3 %vm165_vm2, %v1860_v11 }
  0xd0   :  { %v1318_v15 = vmax.f32 %v1282_v13, 0.0  ;;  %v1809_v13 = vld [vmem:[%s2387_s0 + $0x78] sm:$0xff] }
  0xd1   :  { %v850_v16 = vpop.f32.mrf.mxu2  ;;  %v1165_v17 = vpop.f32.mrf.mxu3 }
  0xd2   :  { %v1354_v18 = vpack.c.bf16 %v1318_v15, %v1318_v15  ;;  %v928_v19 = vmax.f32 %v613_v14, %v850_v16  ;;  %v258_v20 = vpop.f32.mrf.mxu0  ;;  %v537_v21 = vpop.f32.mrf.mxu1  ;;  %v1827_v14 = vld [vmem:[%s2388_s1 + $0x78] sm:$0xff] }
  0xd3   :  { %v614_v25 = vmax.f32 %v258_v20, %v537_v21  ;;  %v1863_v20 = vld [vmem:[%s2390_s3 + $0x78] sm:$0xff] }
  0xd4   :  { %1391 = vst.msk [vmem:[%s2392_s6 + $0x1c] sm:$0xf] %vm1383_vm3, %v1354_v18  ;;  %v1243_v22 = vmax.f32 %v928_v19, %v1165_v17  ;;  %v1845_v19 = vld [vmem:[%s2389_s2 + $0x78] sm:$0xff] }
  0xd6   :  { %v1283_v23 = vadd.f32 %v2060_v50, %v1243_v22 }
  0xd8   :  { %v1319_v24 = vmax.f32 %v1283_v23, 0.0 }
  0xd9   :  { %v852_v26 = vpop.f32.mrf.mxu2  ;;  %v1167_v27 = vpop.f32.mrf.mxu3 }
  0xda   :  { %v1355_v30 = vpack.c.bf16 %v1319_v24, %v1319_v24  ;;  %v929_v31 = vmax.f32 %v614_v25, %v852_v26  ;;  %v261_v32 = vpop.f32.mrf.mxu0  ;;  %v540_v33 = vpop.f32.mrf.mxu1 }
  0xdb   :  { %v615_v38 = vmax.f32 %v261_v32, %v540_v33 }
  0xdc   :  { %1392 = vst.msk [vmem:[%s2392_s6 + $0x20] sm:$0xf] %vm1383_vm3, %v1355_v30  ;;  %v1244_v36 = vmax.f32 %v929_v31, %v1167_v27 }
  0xdd   :  { %1517 = vmatmul.msk.bf16.gmra.mxu0 %vm165_vm2, %v1807_v28  ;;  %1607 = vmatmul.msk.bf16.gmra.mxu1 %vm165_vm2, %v1825_v29 }
  0xde   :  { %v1284_v37 = vadd.f32 %v2060_v50, %v1244_v36  ;;  %1697 = vmatmul.msk.bf16.gmra.mxu2 %vm165_vm2, %v1843_v34  ;;  %1787 = vmatmul.msk.bf16.gmra.mxu3 %vm165_vm2, %v1861_v35 }
  0xe0   :  { %v1320_v39 = vmax.f32 %v1284_v37, 0.0  ;;  %v1810_v37 = vld [vmem:[%s2387_s0 + $0x80] sm:$0xff] }
  0xe1   :  { %v855_v40 = vpop.f32.mrf.mxu2  ;;  %v1170_v41 = vpop.f32.mrf.mxu3 }
  0xe2   :  { %v1356_v42 = vpack.c.bf16 %v1320_v39, %v1320_v39  ;;  %v930_v43 = vmax.f32 %v615_v38, %v855_v40  ;;  %v263_v44 = vpop.f32.mrf.mxu0  ;;  %v542_v45 = vpop.f32.mrf.mxu1  ;;  %v1828_v38 = vld [vmem:[%s2388_s1 + $0x80] sm:$0xff] }
  0xe3   :  { %v616_v49 = vmax.f32 %v263_v44, %v542_v45  ;;  %v1864_v44 = vld [vmem:[%s2390_s3 + $0x80] sm:$0xff] }
  0xe4   :  { %1393 = vst.msk [vmem:[%s2392_s6 + $0x24] sm:$0xf] %vm1383_vm3, %v1356_v42  ;;  %v1245_v46 = vmax.f32 %v930_v43, %v1170_v41  ;;  %v1846_v43 = vld [vmem:[%s2389_s2 + $0x80] sm:$0xff] }
  0xe6   :  { %v1285_v47 = vadd.f32 %v2060_v50, %v1245_v46 }
  0xe8   :  { %v1321_v48 = vmax.f32 %v1285_v47, 0.0 }
  0xe9   :  { %v857_v51 = vpop.f32.mrf.mxu2  ;;  %v1172_v52 = vpop.f32.mrf.mxu3 }
  0xea   :  { %v1357_v55 = vpack.c.bf16 %v1321_v48, %v1321_v48  ;;  %v931_v56 = vmax.f32 %v616_v49, %v857_v51  ;;  %v266_v57 = vpop.f32.mrf.mxu0  ;;  %v545_v58 = vpop.f32.mrf.mxu1 }
  0xeb   :  { %v617_v63 = vmax.f32 %v266_v57, %v545_v58 }
  0xec   :  { %1394 = vst.msk [vmem:[%s2392_s6 + $0x28] sm:$0xf] %vm1383_vm3, %v1357_v55  ;;  %v1246_v61 = vmax.f32 %v931_v56, %v1172_v52 }
  0xed   :  { %1518 = vmatmul.msk.bf16.gmra.mxu0 %vm165_vm2, %v1808_v53  ;;  %1608 = vmatmul.msk.bf16.gmra.mxu1 %vm165_vm2, %v1826_v54 }
  0xee   :  { %v1286_v62 = vadd.f32 %v2060_v50, %v1246_v61  ;;  %1698 = vmatmul.msk.bf16.gmra.mxu2 %vm165_vm2, %v1844_v59  ;;  %1788 = vmatmul.msk.bf16.gmra.mxu3 %vm165_vm2, %v1862_v60 }
  0xf0   :  { %v1322_v0 = vmax.f32 %v1286_v62, 0.0  ;;  %v1811_v62 = vld [vmem:[%s2387_s0 + $0x88] sm:$0xff] }
  0xf1   :  { %v860_v1 = vpop.f32.mrf.mxu2  ;;  %v1175_v2 = vpop.f32.mrf.mxu3 }
  0xf2   :  { %v1358_v3 = vpack.c.bf16 %v1322_v0, %v1322_v0  ;;  %v932_v4 = vmax.f32 %v617_v63, %v860_v1  ;;  %v268_v5 = vpop.f32.mrf.mxu0  ;;  %v547_v6 = vpop.f32.mrf.mxu1  ;;  %v1829_v63 = vld [vmem:[%s2388_s1 + $0x88] sm:$0xff] }
  0xf3   :  { %v618_v10 = vmax.f32 %v268_v5, %v547_v6  ;;  %v1865_v5 = vld [vmem:[%s2390_s3 + $0x88] sm:$0xff] }
  0xf4   :  { %1395 = vst.msk [vmem:[%s2392_s6 + $0x2c] sm:$0xf] %vm1383_vm3, %v1358_v3  ;;  %v1247_v7 = vmax.f32 %v932_v4, %v1175_v2  ;;  %v1847_v4 = vld [vmem:[%s2389_s2 + $0x88] sm:$0xff] }
  0xf6   :  { %v1287_v8 = vadd.f32 %v2060_v50, %v1247_v7 }
  0xf8   :  { %v1323_v9 = vmax.f32 %v1287_v8, 0.0 }
  0xf9   :  { %v862_v11 = vpop.f32.mrf.mxu2  ;;  %v1177_v12 = vpop.f32.mrf.mxu3 }
  0xfa   :  { %v1359_v15 = vpack.c.bf16 %v1323_v9, %v1323_v9  ;;  %v933_v16 = vmax.f32 %v618_v10, %v862_v11  ;;  %v271_v17 = vpop.f32.mrf.mxu0  ;;  %v550_v18 = vpop.f32.mrf.mxu1 }
  0xfb   :  { %v619_v23 = vmax.f32 %v271_v17, %v550_v18 }
  0xfc   :  { %1396 = vst.msk [vmem:[%s2392_s6 + $0x30] sm:$0xf] %vm1383_vm3, %v1359_v15  ;;  %v1248_v21 = vmax.f32 %v933_v16, %v1177_v12 }
  0xfd   :  { %1519 = vmatmul.msk.bf16.gmra.mxu0 %vm165_vm2, %v1809_v13  ;;  %1609 = vmatmul.msk.bf16.gmra.mxu1 %vm165_vm2, %v1827_v14 }
  0xfe   :  { %v1288_v22 = vadd.f32 %v2060_v50, %v1248_v21  ;;  %1699 = vmatmul.msk.bf16.gmra.mxu2 %vm165_vm2, %v1845_v19  ;;  %1789 = vmatmul.msk.bf16.gmra.mxu3 %vm165_vm2, %v1863_v20 }
 0x100   :  { %v1324_v24 = vmax.f32 %v1288_v22, 0.0 }
 0x101   :  { %v865_v25 = vpop.f32.mrf.mxu2  ;;  %v1180_v26 = vpop.f32.mrf.mxu3 }
 0x102   :  { %v1360_v27 = vpack.c.bf16 %v1324_v24, %v1324_v24  ;;  %v934_v28 = vmax.f32 %v619_v23, %v865_v25  ;;  %v273_v29 = vpop.f32.mrf.mxu0  ;;  %v552_v30 = vpop.f32.mrf.mxu1 }
 0x103   :  { %v620_v34 = vmax.f32 %v273_v29, %v552_v30 }
 0x104   :  { %1397 = vst.msk [vmem:[%s2392_s6 + $0x34] sm:$0xf] %vm1383_vm3, %v1360_v27  ;;  %v1249_v31 = vmax.f32 %v934_v28, %v1180_v26 }
 0x106   :  { %v1289_v32 = vadd.f32 %v2060_v50, %v1249_v31 }
 0x108   :  { %v1325_v33 = vmax.f32 %v1289_v32, 0.0 }
 0x109   :  { %v867_v35 = vpop.f32.mrf.mxu2  ;;  %v1182_v36 = vpop.f32.mrf.mxu3 }
 0x10a   :  { %v1361_v39 = vpack.c.bf16 %v1325_v33, %v1325_v33  ;;  %v935_v40 = vmax.f32 %v620_v34, %v867_v35  ;;  %v276_v41 = vpop.f32.mrf.mxu0  ;;  %v555_v42 = vpop.f32.mrf.mxu1 }
 0x10b   :  { %v621_v47 = vmax.f32 %v276_v41, %v555_v42 }
 0x10c   :  { %1398 = vst.msk [vmem:[%s2392_s6 + $0x38] sm:$0xf] %vm1383_vm3, %v1361_v39  ;;  %v1250_v45 = vmax.f32 %v935_v40, %v1182_v36 }
 0x10d   :  { %1520 = vmatmul.msk.bf16.gmra.mxu0 %vm165_vm2, %v1810_v37  ;;  %1610 = vmatmul.msk.bf16.gmra.mxu1 %vm165_vm2, %v1828_v38 }
 0x10e   :  { %v1290_v46 = vadd.f32 %v2060_v50, %v1250_v45  ;;  %1700 = vmatmul.msk.bf16.gmra.mxu2 %vm165_vm2, %v1846_v43  ;;  %1790 = vmatmul.msk.bf16.gmra.mxu3 %vm165_vm2, %v1864_v44 }
 0x110   :  { %v1326_v48 = vmax.f32 %v1290_v46, 0.0 }
 0x111   :  { %v870_v49 = vpop.f32.mrf.mxu2  ;;  %v1185_v51 = vpop.f32.mrf.mxu3 }
 0x112   :  { %v1362_v52 = vpack.c.bf16 %v1326_v48, %v1326_v48  ;;  %v936_v53 = vmax.f32 %v621_v47, %v870_v49  ;;  %v278_v54 = vpop.f32.mrf.mxu0  ;;  %v557_v55 = vpop.f32.mrf.mxu1 }
 0x113   :  { %v622_v59 = vmax.f32 %v278_v54, %v557_v55 }
 0x114   :  { %1399 = vst.msk [vmem:[%s2392_s6 + $0x3c] sm:$0xf] %vm1383_vm3, %v1362_v52  ;;  %v1251_v56 = vmax.f32 %v936_v53, %v1185_v51 }
 0x116   :  { %v1291_v57 = vadd.f32 %v2060_v50, %v1251_v56 }
 0x118   :  { %v1327_v58 = vmax.f32 %v1291_v57, 0.0 }
 0x119   :  { %v872_v60 = vpop.f32.mrf.mxu2  ;;  %v1187_v61 = vpop.f32.mrf.mxu3 }
 0x11a   :  { %v1363_v0 = vpack.c.bf16 %v1327_v58, %v1327_v58  ;;  %v937_v1 = vmax.f32 %v622_v59, %v872_v60  ;;  %v281_v2 = vpop.f32.mrf.mxu0  ;;  %v560_v3 = vpop.f32.mrf.mxu1 }
 0x11b   :  { %v623_v8 = vmax.f32 %v281_v2, %v560_v3 }
 0x11c   :  { %1400 = vst.msk [vmem:[%s2392_s6 + $0x40] sm:$0xf] %vm1383_vm3, %v1363_v0  ;;  %v1252_v6 = vmax.f32 %v937_v1, %v1187_v61 }
 0x11d   :  { %1521 = vmatmul.msk.bf16.gmra.mxu0 %vm165_vm2, %v1811_v62  ;;  %1611 = vmatmul.msk.bf16.gmra.mxu1 %vm165_vm2, %v1829_v63 }
 0x11e   :  { %v1292_v7 = vadd.f32 %v2060_v50, %v1252_v6  ;;  %1701 = vmatmul.msk.bf16.gmra.mxu2 %vm165_vm2, %v1847_v4  ;;  %1791 = vmatmul.msk.bf16.gmra.mxu3 %vm165_vm2, %v1865_v5 }
 0x120   :  { %v1328_v9 = vmax.f32 %v1292_v7, 0.0 }
 0x121   :  { %v875_v10 = vpop.f32.mrf.mxu2  ;;  %v1190_v11 = vpop.f32.mrf.mxu3 }
 0x122   :  { %v1364_v12 = vpack.c.bf16 %v1328_v9, %v1328_v9  ;;  %v938_v13 = vmax.f32 %v623_v8, %v875_v10  ;;  %v283_v14 = vpop.f32.mrf.mxu0  ;;  %v562_v15 = vpop.f32.mrf.mxu1 }
 0x123   :  { %v624_v19 = vmax.f32 %v283_v14, %v562_v15 }
 0x124   :  { %1401 = vst.msk [vmem:[%s2392_s6 + $0x44] sm:$0xf] %vm1383_vm3, %v1364_v12  ;;  %v1253_v16 = vmax.f32 %v938_v13, %v1190_v11 }
 0x126   :  { %v1293_v17 = vadd.f32 %v2060_v50, %v1253_v16 }
 0x128   :  { %v1329_v18 = vmax.f32 %v1293_v17, 0.0 }
 0x129   :  { %v877_v20 = vpop.f32.mrf.mxu2  ;;  %v1192_v21 = vpop.f32.mrf.mxu3 }
 0x12a   :  { %v1365_v22 = vpack.c.bf16 %v1329_v18, %v1329_v18  ;;  %v939_v23 = vmax.f32 %v624_v19, %v877_v20  ;;  %v286_v24 = vpop.f32.mrf.mxu0  ;;  %v565_v25 = vpop.f32.mrf.mxu1 }
 0x12b   :  { %v625_v28 = vmax.f32 %v286_v24, %v565_v25 }
 0x12c   :  { %1402 = vst.msk [vmem:[%s2392_s6 + $0x48] sm:$0xf] %vm1383_vm3, %v1365_v22  ;;  %v1254_v26 = vmax.f32 %v939_v23, %v1192_v21 }
 0x12e   :  { %v1294_v27 = vadd.f32 %v2060_v50, %v1254_v26 }
 0x130   :  { %v1330_v29 = vmax.f32 %v1294_v27, 0.0 }
 0x131   :  { %v880_v30 = vpop.f32.mrf.mxu2  ;;  %v1195_v31 = vpop.f32.mrf.mxu3 }
 0x132   :  { %v1366_v32 = vpack.c.bf16 %v1330_v29, %v1330_v29  ;;  %v940_v33 = vmax.f32 %v625_v28, %v880_v30  ;;  %v288_v34 = vpop.f32.mrf.mxu0  ;;  %v567_v35 = vpop.f32.mrf.mxu1 }
 0x133   :  { %v626_v39 = vmax.f32 %v288_v34, %v567_v35 }
 0x134   :  { %1403 = vst.msk [vmem:[%s2392_s6 + $0x4c] sm:$0xf] %vm1383_vm3, %v1366_v32  ;;  %v1255_v36 = vmax.f32 %v940_v33, %v1195_v31 }
 0x136   :  { %v1295_v37 = vadd.f32 %v2060_v50, %v1255_v36 }
 0x138   :  { %v1331_v38 = vmax.f32 %v1295_v37, 0.0 }
 0x139   :  { %v882_v40 = vpop.f32.mrf.mxu2  ;;  %v1197_v41 = vpop.f32.mrf.mxu3 }
 0x13a   :  { %v1367_v42 = vpack.c.bf16 %v1331_v38, %v1331_v38  ;;  %v941_v43 = vmax.f32 %v626_v39, %v882_v40  ;;  %v291_v44 = vpop.f32.mrf.mxu0  ;;  %v570_v45 = vpop.f32.mrf.mxu1 }
 0x13b   :  { %v627_v48 = vmax.f32 %v291_v44, %v570_v45 }
 0x13c   :  { %1404 = vst.msk [vmem:[%s2392_s6 + $0x50] sm:$0xf] %vm1383_vm3, %v1367_v42  ;;  %v1256_v46 = vmax.f32 %v941_v43, %v1197_v41 }
 0x13e   :  { %v1296_v47 = vadd.f32 %v2060_v50, %v1256_v46 }
 0x140   :  { %v1332_v49 = vmax.f32 %v1296_v47, 0.0 }
 0x141   :  { %v885_v51 = vpop.f32.mrf.mxu2  ;;  %v1200_v52 = vpop.f32.mrf.mxu3 }
 0x142   :  { %v1368_v53 = vpack.c.bf16 %v1332_v49, %v1332_v49  ;;  %v942_v54 = vmax.f32 %v627_v48, %v885_v51  ;;  %v293_v55 = vpop.f32.mrf.mxu0  ;;  %v572_v56 = vpop.f32.mrf.mxu1 }
 0x143   :  { %v628_v60 = vmax.f32 %v293_v55, %v572_v56 }
 0x144   :  { %1405 = vst.msk [vmem:[%s2392_s6 + $0x54] sm:$0xf] %vm1383_vm3, %v1368_v53  ;;  %v1257_v57 = vmax.f32 %v942_v54, %v1200_v52 }
 0x146   :  { %v1297_v58 = vadd.f32 %v2060_v50, %v1257_v57 }
 0x148   :  { %v1333_v59 = vmax.f32 %v1297_v58, 0.0 }
 0x149   :  { %v887_v61 = vpop.f32.mrf.mxu2  ;;  %v1202_v62 = vpop.f32.mrf.mxu3 }
 0x14a   :  { %v1369_v63 = vpack.c.bf16 %v1333_v59, %v1333_v59  ;;  %v943_v0 = vmax.f32 %v628_v60, %v887_v61  ;;  %v296_v1 = vpop.f32.mrf.mxu0  ;;  %v575_v2 = vpop.f32.mrf.mxu1 }
 0x14b   :  { %v629_v5 = vmax.f32 %v296_v1, %v575_v2 }
 0x14c   :  { %1406 = vst.msk [vmem:[%s2392_s6 + $0x58] sm:$0xf] %vm1383_vm3, %v1369_v63  ;;  %v1258_v3 = vmax.f32 %v943_v0, %v1202_v62 }
 0x14e   :  { %v1298_v4 = vadd.f32 %v2060_v50, %v1258_v3 }
 0x150   :  { %v1334_v6 = vmax.f32 %v1298_v4, 0.0 }
 0x151   :  { %v890_v7 = vpop.f32.mrf.mxu2  ;;  %v1205_v8 = vpop.f32.mrf.mxu3 }
 0x152   :  { %v1370_v9 = vpack.c.bf16 %v1334_v6, %v1334_v6  ;;  %v944_v10 = vmax.f32 %v629_v5, %v890_v7  ;;  %v298_v11 = vpop.f32.mrf.mxu0  ;;  %v577_v12 = vpop.f32.mrf.mxu1 }
 0x153   :  { %v630_v16 = vmax.f32 %v298_v11, %v577_v12 }
 0x154   :  { %1407 = vst.msk [vmem:[%s2392_s6 + $0x5c] sm:$0xf] %vm1383_vm3, %v1370_v9  ;;  %v1259_v13 = vmax.f32 %v944_v10, %v1205_v8 }
 0x156   :  { %v1299_v14 = vadd.f32 %v2060_v50, %v1259_v13 }
 0x158   :  { %v1335_v15 = vmax.f32 %v1299_v14, 0.0 }
 0x159   :  { %v892_v17 = vpop.f32.mrf.mxu2  ;;  %v1207_v18 = vpop.f32.mrf.mxu3 }
 0x15a   :  { %v1371_v19 = vpack.c.bf16 %v1335_v15, %v1335_v15  ;;  %v945_v20 = vmax.f32 %v630_v16, %v892_v17  ;;  %v301_v21 = vpop.f32.mrf.mxu0  ;;  %v580_v22 = vpop.f32.mrf.mxu1 }
 0x15b   :  { %v631_v25 = vmax.f32 %v301_v21, %v580_v22 }
 0x15c   :  { %1408 = vst.msk [vmem:[%s2392_s6 + $0x60] sm:$0xf] %vm1383_vm3, %v1371_v19  ;;  %v1260_v23 = vmax.f32 %v945_v20, %v1207_v18 }
 0x15e   :  { %v1300_v24 = vadd.f32 %v2060_v50, %v1260_v23 }
 0x160   :  { %v1336_v26 = vmax.f32 %v1300_v24, 0.0 }
 0x161   :  { %v895_v27 = vpop.f32.mrf.mxu2  ;;  %v1210_v28 = vpop.f32.mrf.mxu3 }
 0x162   :  { %v1372_v29 = vpack.c.bf16 %v1336_v26, %v1336_v26  ;;  %v946_v30 = vmax.f32 %v631_v25, %v895_v27  ;;  %v303_v31 = vpop.f32.mrf.mxu0  ;;  %v582_v32 = vpop.f32.mrf.mxu1 }
 0x163   :  { %v632_v36 = vmax.f32 %v303_v31, %v582_v32 }
 0x164   :  { %1409 = vst.msk [vmem:[%s2392_s6 + $0x64] sm:$0xf] %vm1383_vm3, %v1372_v29  ;;  %v1261_v33 = vmax.f32 %v946_v30, %v1210_v28 }
 0x166   :  { %v1301_v34 = vadd.f32 %v2060_v50, %v1261_v33 }
 0x168   :  { %v1337_v35 = vmax.f32 %v1301_v34, 0.0 }
 0x169   :  { %v897_v37 = vpop.f32.mrf.mxu2  ;;  %v1212_v38 = vpop.f32.mrf.mxu3 }
 0x16a   :  { %v1373_v39 = vpack.c.bf16 %v1337_v35, %v1337_v35  ;;  %v947_v40 = vmax.f32 %v632_v36, %v897_v37  ;;  %v306_v41 = vpop.f32.mrf.mxu0  ;;  %v585_v42 = vpop.f32.mrf.mxu1 }
 0x16b   :  { %v633_v45 = vmax.f32 %v306_v41, %v585_v42 }
 0x16c   :  { %1410 = vst.msk [vmem:[%s2392_s6 + $0x68] sm:$0xf] %vm1383_vm3, %v1373_v39  ;;  %v1262_v43 = vmax.f32 %v947_v40, %v1212_v38 }
 0x16e   :  { %v1302_v44 = vadd.f32 %v2060_v50, %v1262_v43 }
 0x170   :  { %v1338_v46 = vmax.f32 %v1302_v44, 0.0 }
 0x171   :  { %v900_v47 = vpop.f32.mrf.mxu2  ;;  %v1215_v48 = vpop.f32.mrf.mxu3 }
 0x172   :  { %v1374_v49 = vpack.c.bf16 %v1338_v46, %v1338_v46  ;;  %v948_v51 = vmax.f32 %v633_v45, %v900_v47  ;;  %v308_v52 = vpop.f32.mrf.mxu0  ;;  %v587_v53 = vpop.f32.mrf.mxu1 }
 0x173   :  { %v634_v57 = vmax.f32 %v308_v52, %v587_v53 }
 0x174   :  { %1411 = vst.msk [vmem:[%s2392_s6 + $0x6c] sm:$0xf] %vm1383_vm3, %v1374_v49  ;;  %v1263_v54 = vmax.f32 %v948_v51, %v1215_v48 }
 0x176   :  { %v1303_v55 = vadd.f32 %v2060_v50, %v1263_v54 }
 0x178   :  { %v1339_v56 = vmax.f32 %v1303_v55, 0.0 }
 0x179   :  { %v902_v58 = vpop.f32.mrf.mxu2  ;;  %v1217_v59 = vpop.f32.mrf.mxu3 }
 0x17a   :  { %v1375_v60 = vpack.c.bf16 %v1339_v56, %v1339_v56  ;;  %v949_v61 = vmax.f32 %v634_v57, %v902_v58  ;;  %v311_v62 = vpop.f32.mrf.mxu0  ;;  %v590_v63 = vpop.f32.mrf.mxu1 }
 0x17b   :  { %v635_v2 = vmax.f32 %v311_v62, %v590_v63 }
 0x17c   :  { %1412 = vst.msk [vmem:[%s2392_s6 + $0x70] sm:$0xf] %vm1383_vm3, %v1375_v60  ;;  %v1264_v0 = vmax.f32 %v949_v61, %v1217_v59 }
 0x17e   :  { %v1304_v1 = vadd.f32 %v2060_v50, %v1264_v0 }
 0x180   :  { %v1340_v3 = vmax.f32 %v1304_v1, 0.0 }
 0x181   :  { %v905_v4 = vpop.f32.mrf.mxu2  ;;  %v1220_v5 = vpop.f32.mrf.mxu3 }
 0x182   :  { %v1376_v6 = vpack.c.bf16 %v1340_v3, %v1340_v3  ;;  %v950_v7 = vmax.f32 %v635_v2, %v905_v4  ;;  %v313_v8 = vpop.f32.mrf.mxu0  ;;  %v592_v9 = vpop.f32.mrf.mxu1 }
 0x183   :  { %v636_v13 = vmax.f32 %v313_v8, %v592_v9 }
 0x184   :  { %1413 = vst.msk [vmem:[%s2392_s6 + $0x74] sm:$0xf] %vm1383_vm3, %v1376_v6  ;;  %v1265_v10 = vmax.f32 %v950_v7, %v1220_v5 }
 0x186   :  { %v1305_v11 = vadd.f32 %v2060_v50, %v1265_v10 }
 0x188   :  { %v1341_v12 = vmax.f32 %v1305_v11, 0.0 }
 0x189   :  { %v907_v14 = vpop.f32.mrf.mxu2  ;;  %v1222_v15 = vpop.f32.mrf.mxu3 }
 0x18a   :  { %v1377_v16 = vpack.c.bf16 %v1341_v12, %v1341_v12  ;;  %v951_v17 = vmax.f32 %v636_v13, %v907_v14  ;;  %v316_v18 = vpop.f32.mrf.mxu0  ;;  %v595_v19 = vpop.f32.mrf.mxu1 }
 0x18b   :  { %v637_v22 = vmax.f32 %v316_v18, %v595_v19 }
 0x18c   :  { %1414 = vst.msk [vmem:[%s2392_s6 + $0x78] sm:$0xf] %vm1383_vm3, %v1377_v16  ;;  %v1266_v20 = vmax.f32 %v951_v17, %v1222_v15 }
 0x18e   :  { %v1306_v21 = vadd.f32 %v2060_v50, %v1266_v20 }
 0x190   :  { %v1342_v23 = vmax.f32 %v1306_v21, 0.0 }
 0x191   :  { %v910_v24 = vpop.f32.mrf.mxu2  ;;  %v1225_v25 = vpop.f32.mrf.mxu3 }
 0x192   :  { %v1378_v26 = vpack.c.bf16 %v1342_v23, %v1342_v23  ;;  %v952_v27 = vmax.f32 %v637_v22, %v910_v24  ;;  %v318_v28 = vpop.f32.mrf.mxu0  ;;  %v597_v29 = vpop.f32.mrf.mxu1 }
 0x193   :  { %v638_v33 = vmax.f32 %v318_v28, %v597_v29 }
 0x194   :  { %1415 = vst.msk [vmem:[%s2392_s6 + $0x7c] sm:$0xf] %vm1383_vm3, %v1378_v26  ;;  %v1267_v30 = vmax.f32 %v952_v27, %v1225_v25 }
 0x196   :  { %v1307_v31 = vadd.f32 %v2060_v50, %v1267_v30 }
 0x198   :  { %v1343_v32 = vmax.f32 %v1307_v31, 0.0 }
 0x199   :  { %v912_v34 = vpop.f32.mrf.mxu2  ;;  %v1227_v35 = vpop.f32.mrf.mxu3 }
 0x19a   :  { %v1379_v36 = vpack.c.bf16 %v1343_v32, %v1343_v32  ;;  %v953_v37 = vmax.f32 %v638_v33, %v912_v34  ;;  %v321_v38 = vpop.f32.mrf.mxu0  ;;  %v600_v39 = vpop.f32.mrf.mxu1 }
 0x19b   :  { %v639_v42 = vmax.f32 %v321_v38, %v600_v39 }
 0x19c   :  { %1416 = vst.msk [vmem:[%s2392_s6 + $0x80] sm:$0xf] %vm1383_vm3, %v1379_v36  ;;  %v1268_v40 = vmax.f32 %v953_v37, %v1227_v35 }
 0x19e   :  { %v1308_v41 = vadd.f32 %v2060_v50, %v1268_v40 }
 0x1a0   :  { %v1344_v43 = vmax.f32 %v1308_v41, 0.0 }
 0x1a1   :  { %v915_v44 = vpop.f32.mrf.mxu2  ;;  %v1230_v45 = vpop.f32.mrf.mxu3 }
 0x1a2   :  { %v1380_v46 = vpack.c.bf16 %v1344_v43, %v1344_v43  ;;  %v954_v47 = vmax.f32 %v639_v42, %v915_v44  ;;  %v323_v49 = vpop.f32.mrf.mxu0  ;;  %v602_v51 = vpop.f32.mrf.mxu1 }
 0x1a3   :  { %v640_v54 = vmax.f32 %v323_v49, %v602_v51 }
 0x1a4   :  { %1417 = vst.msk [vmem:[%s2392_s6 + $0x84] sm:$0xf] %vm1383_vm3, %v1380_v46  ;;  %v1269_v48 = vmax.f32 %v954_v47, %v1230_v45 }
 0x1a6   :  { %v1309_v52 = vadd.f32 %v2060_v50, %v1269_v48 }
 0x1a8   :  { %v1345_v53 = vmax.f32 %v1309_v52, 0.0 }
 0x1a9   :  { %v917_v55 = vpop.f32.mrf.mxu2  ;;  %v1232_v58 = vpop.f32.mrf.mxu3 }
 0x1aa   :  { %v1381_v56 = vpack.c.bf16 %v1345_v53, %v1345_v53  ;;  %v955_v57 = vmax.f32 %v640_v54, %v917_v55 }
 0x1ac   :  { %1418 = vst.msk [vmem:[%s2392_s6 + $0x88] sm:$0xf] %vm1383_vm3, %v1381_v56  ;;  %v1270_v59 = vmax.f32 %v955_v57, %v1232_v58 }
 0x1ae   :  { %v1310_v60 = vadd.f32 %v2060_v50, %v1270_v59 }
 0x1b0   :  { %v1346_v61 = vmax.f32 %v1310_v60, 0.0 }
 0x1b2   :  { %v1382_v62 = vpack.c.bf16 %v1346_v61, %v1346_v61 }
 0x1b4   :  { %1419 = vst.msk [vmem:[%s2392_s6 + $0x8c] sm:$0xf] %vm1383_vm3, %v1382_v62 }

// kernel: simple_mnist_forward.4
= control target key start
LH: loop header
LB: loop body
LE: loop exit
PB: predicated region body
PF: predicated region fallthrough
CT: control target
= control target key end

     0   :  { %vm179_vm0 = vcmask 1044480   ;;  %vm172_vm1 = vcmask 998400   ;;  %vm447_vm2 = vcmask 158720   ;;  %s930_s4 = inlined_call_operand.vmem [shape: bf16[250,20], index: 4, kind: input, shape index: {}]   ;;  %s931_s0 = inlined_call_operand.vmem [shape: bf16[32,250], index: 0, kind: input, shape index: {}]   ;;  %s932_s1 = inlined_call_operand.vmem [shape: bf16[32,250], index: 1, kind: input, shape index: {}]   ;;  %s933_s2 = inlined_call_operand.vmem [shape: bf16[32,250], index: 2, kind: input, shape index: {}]   ;;  %s934_s3 = inlined_call_operand.vmem [shape: bf16[32,250], index: 3, kind: input, shape index: {}]   ;;  %s935_s5 = inlined_call_operand.vmem [shape: f32[1,20], index: 5, kind: input, shape index: {}]   ;;  %s936_s6 = inlined_call_operand.vmem [shape: bf16[32,20], index: 6, kind: output, shape index: {}]  }
   0x1   :  { %v663_v0 = vld [vmem:[%s930_s4 + $0x38] sm:$0xff]  ;;  %v676_v4 = vld [vmem:[%s930_s4 + $0x30] sm:$0xff]  ;;  %v692_v7 = vld [vmem:[%s930_s4 + $0x28] sm:$0xff] }
   0x2   :  { %v534_v1 = vld [vmem:[%s930_s4 + $0x78] sm:$0xf]  ;;  %v607_v2 = vld [vmem:[%s930_s4 + $0x78] sm:$0x10]  ;;  %183 = vmatpush.bf16.msra.mxu0 %v663_v0  ;;  %249 = vmatpush.bf16.msra.mxu2 %v663_v0  ;;  %v685_v6 = vld [vmem:[%s930_s4 + $0x70] sm:$0xff] }
   0x3   :  { %v535_v3 = vor.u32 %v607_v2, %v534_v1  ;;  %v699_v8 = vld [vmem:[%s930_s4 + $0x68] sm:$0xff]  ;;  %v706_v9 = vld [vmem:[%s930_s4 + $0x20] sm:$0xff]  ;;  %v720_v11 = vld [vmem:[%s930_s4 + $0x18] sm:$0xff] }
   0x4   :  { %v713_v10 = vld [vmem:[%s930_s4 + $0x60] sm:$0xff]  ;;  %v727_v12 = vld [vmem:[%s930_s4 + $0x58] sm:$0xff]  ;;  %v734_v13 = vld [vmem:[%s930_s4 + $0x10] sm:$0xff] }
   0x5   :  { %v678_v5 = vsel %vm179_vm0, %v535_v3, 0  ;;  %v741_v14 = vld [vmem:[%s930_s4 + $0x50] sm:$0xff]  ;;  %v748_v15 = vld [vmem:[%s930_s4 + $0x8] sm:$0xff]  ;;  %v760_v17 = vld [vmem:[%s930_s4] sm:$0xff] }
   0x6   :  { %202 = vmatpush.bf16.msra.mxu1 %v678_v5  ;;  %268 = vmatpush.bf16.msra.mxu3 %v678_v5  ;;  %v755_v16 = vld [vmem:[%s930_s4 + $0x48] sm:$0xff]  ;;  %v458_v18 = vld [vmem:[%s931_s0] sm:$0xf]  ;;  %v608_v23 = vld [vmem:[%s931_s0 + $0x4] sm:$0xf] }
   0x7   :  { %184 = vmatpush.bf16.msra.mxu0 %v676_v4  ;;  %250 = vmatpush.bf16.msra.mxu2 %v676_v4  ;;  %v609_v19 = vld [vmem:[%s931_s0 + $0x4] sm:$0xf0]  ;;  %v540_v20 = vld [vmem:[%s932_s1] sm:$0xf]  ;;  %v460_v24 = vld [vmem:[%s931_s0 + $0x8] sm:$0xf0] }
   0x8   :  { %v613_v21 = vld [vmem:[%s932_s1 + $0x4] sm:$0xf0]  ;;  %v779_v22 = vld [vmem:[%s930_s4 + $0x40] sm:$0xff]  ;;  %v542_v26 = vld [vmem:[%s932_s1 + $0x8] sm:$0xf0]  ;;  %v459_v27 = vor.u32 %v609_v19, %v458_v18  ;;  %v463_v29 = vor.u32 %v608_v23, %v460_v24 }
   0x9   :  { %v612_v25 = vld [vmem:[%s932_s1 + $0x4] sm:$0xf]  ;;  %v541_v28 = vor.u32 %v613_v21, %v540_v20  ;;  %v466_v31 = vld [vmem:[%s931_s0 + $0x10] sm:$0xf]  ;;  %v611_v32 = vld [vmem:[%s931_s0 + $0x14] sm:$0xf0] }
   0xa   :  { %203 = vmatpush.bf16.msra.mxu1 %v685_v6  ;;  %269 = vmatpush.bf16.msra.mxu3 %v685_v6  ;;  %v545_v30 = vor.u32 %v612_v25, %v542_v26  ;;  %v548_v33 = vld [vmem:[%s932_s1 + $0x10] sm:$0xf]  ;;  %v615_v34 = vld [vmem:[%s932_s1 + $0x14] sm:$0xf0]  ;;  %v610_v35 = vld [vmem:[%s931_s0 + $0x14] sm:$0xf]  ;;  %v467_v39 = vor.u32 %v611_v32, %v466_v31 }
   0xb   :  { %185 = vmatpush.bf16.msra.mxu0 %v692_v7  ;;  %251 = vmatpush.bf16.msra.mxu2 %v692_v7  ;;  %v468_v36 = vld [vmem:[%s931_s0 + $0x18] sm:$0xf0]  ;;  %v614_v37 = vld [vmem:[%s932_s1 + $0x14] sm:$0xf]  ;;  %v549_v40 = vor.u32 %v615_v34, %v548_v33  ;;  %v558_v43 = vld [vmem:[%s933_s2] sm:$0xf] }
   0xc   :  { %v550_v38 = vld [vmem:[%s932_s1 + $0x18] sm:$0xf0]  ;;  %v471_v41 = vor.u32 %v610_v35, %v468_v36  ;;  %v617_v44 = vld [vmem:[%s933_s2 + $0x4] sm:$0xf0]  ;;  %v576_v45 = vld [vmem:[%s934_s3] sm:$0xf] }
   0xd   :  { %v553_v42 = vor.u32 %v614_v37, %v550_v38  ;;  %v621_v46 = vld [vmem:[%s934_s3 + $0x4] sm:$0xf0]  ;;  %v616_v47 = vld [vmem:[%s933_s2 + $0x4] sm:$0xf]  ;;  %v560_v48 = vld [vmem:[%s933_s2 + $0x8] sm:$0xf0]  ;;  %v559_v51 = vor.u32 %v617_v44, %v558_v43 }
   0xe   :  { %204 = vmatpush.bf16.msra.mxu1 %v699_v8  ;;  %270 = vmatpush.bf16.msra.mxu3 %v699_v8  ;;  %v620_v49 = vld [vmem:[%s934_s3 + $0x4] sm:$0xf]  ;;  %v578_v50 = vld [vmem:[%s934_s3 + $0x8] sm:$0xf0]  ;;  %v577_v52 = vor.u32 %v621_v46, %v576_v45  ;;  %v563_v53 = vor.u32 %v616_v47, %v560_v48  ;;  %v566_v55 = vld [vmem:[%s933_s2 + $0x10] sm:$0xf] }
   0xf   :  { %186 = vmatpush.bf16.msra.mxu0 %v706_v9  ;;  %252 = vmatpush.bf16.msra.mxu2 %v706_v9  ;;  %v581_v54 = vor.u32 %v620_v49, %v578_v50  ;;  %v619_v56 = vld [vmem:[%s933_s2 + $0x14] sm:$0xf0]  ;;  %v584_v57 = vld [vmem:[%s934_s3 + $0x10] sm:$0xf]  ;;  %v618_v59 = vld [vmem:[%s933_s2 + $0x14] sm:$0xf] }
  0x10   :  { %v623_v58 = vld [vmem:[%s934_s3 + $0x14] sm:$0xf0]  ;;  %v568_v60 = vld [vmem:[%s933_s2 + $0x18] sm:$0xf0]  ;;  %v622_v61 = vld [vmem:[%s934_s3 + $0x14] sm:$0xf]  ;;  %v567_v63 = vor.u32 %v619_v56, %v566_v55 }
  0x11   :  { %v586_v62 = vld [vmem:[%s934_s3 + $0x18] sm:$0xf0]  ;;  %v571_v1 = vor.u32 %v618_v59, %v568_v60 }
  0x12   :  { %205 = vmatpush.bf16.msra.mxu1 %v713_v10  ;;  %271 = vmatpush.bf16.msra.mxu3 %v713_v10  ;;  %v589_v2 = vor.u32 %v622_v61, %v586_v62 }
  0x13   :  { %187 = vmatpush.bf16.msra.mxu0 %v720_v11  ;;  %253 = vmatpush.bf16.msra.mxu2 %v720_v11 }
  0x16   :  { %206 = vmatpush.bf16.msra.mxu1 %v727_v12  ;;  %272 = vmatpush.bf16.msra.mxu3 %v727_v12 }
  0x17   :  { %188 = vmatpush.bf16.msra.mxu0 %v734_v13  ;;  %254 = vmatpush.bf16.msra.mxu2 %v734_v13 }
  0x1a   :  { %207 = vmatpush.bf16.msra.mxu1 %v741_v14  ;;  %273 = vmatpush.bf16.msra.mxu3 %v741_v14 }
  0x1b   :  { %189 = vmatpush.bf16.msra.mxu0 %v748_v15  ;;  %255 = vmatpush.bf16.msra.mxu2 %v748_v15 }
  0x1e   :  { %208 = vmatpush.bf16.msra.mxu1 %v755_v16  ;;  %274 = vmatpush.bf16.msra.mxu3 %v755_v16 }
  0x1f   :  { %190 = vmatpush.bf16.msra.mxu0 %v760_v17  ;;  %256 = vmatpush.bf16.msra.mxu2 %v760_v17 }
  0x22   :  { %209 = vmatpush.bf16.msra.mxu1 %v779_v22  ;;  %275 = vmatpush.bf16.msra.mxu3 %v779_v22 }
  0x23   :  { %319 = vmatpush.bf16.msrb.mxu0 %v663_v0  ;;  %389 = vmatpush.bf16.msrb.mxu2 %v663_v0  ;;  %v585_v0 = vor.u32 %v623_v58, %v584_v57 }
  0x24   :  { %191 = vmatmul.bf16.vlgmr.msra.gmra.mxu0 %v459_v27  ;;  %257 = vmatmul.bf16.vlgmr.msra.gmra.mxu2 %v541_v28 }
  0x25   :  { %536 = vmatmul.msk.bf16.vlgmr.msra.gmra.mxu1 %vm172_vm1, %v463_v29  ;;  %554 = vmatmul.msk.bf16.vlgmr.msra.gmra.mxu3 %vm172_vm1, %v545_v30  ;;  %v624_v30 = vld [vmem:[%s935_s5] ss:$0 sm:$0xff] }
  0x26   :  { %408 = vmatpush.bf16.msrb.mxu3 %v678_v5  ;;  %338 = vmatpush.bf16.msrb.mxu1 %v678_v5 }
  0x27   :  { %320 = vmatpush.bf16.msrb.mxu0 %v676_v4  ;;  %390 = vmatpush.bf16.msrb.mxu2 %v676_v4 }
  0x2a   :  { %409 = vmatpush.bf16.msrb.mxu3 %v685_v6  ;;  %339 = vmatpush.bf16.msrb.mxu1 %v685_v6 }
  0x2b   :  { %321 = vmatpush.bf16.msrb.mxu0 %v692_v7  ;;  %391 = vmatpush.bf16.msrb.mxu2 %v692_v7 }
  0x2e   :  { %410 = vmatpush.bf16.msrb.mxu3 %v699_v8  ;;  %340 = vmatpush.bf16.msrb.mxu1 %v699_v8 }
  0x2f   :  { %322 = vmatpush.bf16.msrb.mxu0 %v706_v9  ;;  %392 = vmatpush.bf16.msrb.mxu2 %v706_v9 }
  0x32   :  { %411 = vmatpush.bf16.msrb.mxu3 %v713_v10  ;;  %341 = vmatpush.bf16.msrb.mxu1 %v713_v10 }
  0x33   :  { %323 = vmatpush.bf16.msrb.mxu0 %v720_v11  ;;  %393 = vmatpush.bf16.msrb.mxu2 %v720_v11 }
  0x34   :  { %196 = vmatmul.bf16.gmra.mxu0 %v467_v39  ;;  %262 = vmatmul.bf16.gmra.mxu2 %v549_v40 }
  0x35   :  { %537 = vmatmul.msk.bf16.gmra.mxu1 %vm172_vm1, %v471_v41  ;;  %555 = vmatmul.msk.bf16.gmra.mxu3 %vm172_vm1, %v553_v42 }
  0x36   :  { %412 = vmatpush.bf16.msrb.mxu3 %v727_v12  ;;  %342 = vmatpush.bf16.msrb.mxu1 %v727_v12 }
  0x37   :  { %324 = vmatpush.bf16.msrb.mxu0 %v734_v13  ;;  %394 = vmatpush.bf16.msrb.mxu2 %v734_v13 }
  0x3a   :  { %413 = vmatpush.bf16.msrb.mxu3 %v741_v14  ;;  %343 = vmatpush.bf16.msrb.mxu1 %v741_v14 }
  0x3b   :  { %325 = vmatpush.bf16.msrb.mxu0 %v748_v15  ;;  %395 = vmatpush.bf16.msrb.mxu2 %v748_v15 }
  0x3e   :  { %414 = vmatpush.bf16.msrb.mxu3 %v755_v16  ;;  %344 = vmatpush.bf16.msrb.mxu1 %v755_v16 }
  0x3f   :  { %326 = vmatpush.bf16.msrb.mxu0 %v760_v17  ;;  %396 = vmatpush.bf16.msrb.mxu2 %v760_v17 }
  0x42   :  { %415 = vmatpush.bf16.msrb.mxu3 %v779_v22  ;;  %345 = vmatpush.bf16.msrb.mxu1 %v779_v22 }
  0x44   :  { %327 = vmatmul.bf16.vlgmr.msrb.gmra.mxu0 %v559_v51  ;;  %397 = vmatmul.bf16.vlgmr.msrb.gmra.mxu2 %v577_v52 }
  0x45   :  { %572 = vmatmul.msk.bf16.vlgmr.msrb.gmra.mxu1 %vm172_vm1, %v563_v53  ;;  %590 = vmatmul.msk.bf16.vlgmr.msrb.gmra.mxu3 %vm172_vm1, %v581_v54 }
  0x54   :  { %332 = vmatmul.bf16.gmra.mxu0 %v567_v63  ;;  %402 = vmatmul.bf16.gmra.mxu2 %v585_v0 }
  0x55   :  { %573 = vmatmul.msk.bf16.gmra.mxu1 %vm172_vm1, %v571_v1  ;;  %591 = vmatmul.msk.bf16.gmra.mxu3 %vm172_vm1, %v589_v2 }
  0xa1   :  { %v192_v3 = vpop.f32.mrf.mxu0 }
  0xa2   :  { %v211_v4 = vpop.f32.mrf.mxu1 }
  0xa3   :  { %v212_v22 = vadd.f32 %v211_v4, %v192_v3 }
  0xa7   :  { %v258_v5 = vpop.f32.mrf.mxu2 }
  0xa8   :  { %v277_v6 = vpop.f32.mrf.mxu3 }
  0xa9   :  { %v194_v7 = vpop.f32.mrf.mxu0  ;;  %v278_v21 = vadd.f32 %v277_v6, %v258_v5 }
  0xaa   :  { %v213_v8 = vpop.f32.mrf.mxu1 }
  0xab   :  { %v287_v25 = vmax.f32 %v212_v22, %v278_v21  ;;  %v214_v34 = vadd.f32 %v213_v8, %v194_v7 }
  0xaf   :  { %v260_v9 = vpop.f32.mrf.mxu2 }
  0xb0   :  { %v279_v10 = vpop.f32.mrf.mxu3 }
  0xb1   :  { %v197_v11 = vpop.f32.mrf.mxu0  ;;  %v280_v32 = vadd.f32 %v279_v10, %v260_v9 }
  0xb2   :  { %v216_v12 = vpop.f32.mrf.mxu1 }
  0xb3   :  { %v288_v38 = vmax.f32 %v214_v34, %v280_v32  ;;  %v217_v48 = vadd.f32 %v216_v12, %v197_v11 }
  0xb7   :  { %v263_v13 = vpop.f32.mrf.mxu2 }
  0xb8   :  { %v282_v14 = vpop.f32.mrf.mxu3 }
  0xb9   :  { %v199_v15 = vpop.f32.mrf.mxu0  ;;  %v283_v46 = vadd.f32 %v282_v14, %v263_v13 }
  0xba   :  { %v218_v16 = vpop.f32.mrf.mxu1 }
  0xbb   :  { %v289_v52 = vmax.f32 %v217_v48, %v283_v46  ;;  %v219_v62 = vadd.f32 %v218_v16, %v199_v15 }
  0xbf   :  { %v265_v17 = vpop.f32.mrf.mxu2 }
  0xc0   :  { %v284_v18 = vpop.f32.mrf.mxu3 }
  0xc1   :  { %v328_v19 = vpop.f32.mrf.mxu0  ;;  %v285_v59 = vadd.f32 %v284_v18, %v265_v17 }
  0xc2   :  { %v347_v20 = vpop.f32.mrf.mxu1 }
  0xc3   :  { %v348_v23 = vadd.f32 %v347_v20, %v328_v19  ;;  %v290_v1 = vmax.f32 %v219_v62, %v285_v59 }
  0xc5   :  { %v357_v28 = vmax.f32 %v287_v25, %v348_v23 }
  0xc7   :  { %v398_v24 = vpop.f32.mrf.mxu2 }
  0xc8   :  { %v417_v26 = vpop.f32.mrf.mxu3 }
  0xc9   :  { %v330_v27 = vpop.f32.mrf.mxu0  ;;  %v418_v29 = vadd.f32 %v417_v26, %v398_v24 }
  0xca   :  { %v349_v31 = vpop.f32.mrf.mxu1 }
  0xcb   :  { %v427_v33 = vmax.f32 %v357_v28, %v418_v29  ;;  %v350_v36 = vadd.f32 %v349_v31, %v330_v27 }
  0xcd   :  { %v435_v35 = vadd.f32 %v624_v30, %v427_v33  ;;  %v358_v42 = vmax.f32 %v288_v38, %v350_v36 }
  0xcf   :  { %v400_v37 = vpop.f32.mrf.mxu2  ;;  %v439_v39 = vmax.f32 %v435_v35, 0.0 }
  0xd0   :  { %v419_v40 = vpop.f32.mrf.mxu3 }
  0xd1   :  { %v443_v41 = vpack.c.bf16 %v439_v39, %v439_v39  ;;  %v420_v43 = vadd.f32 %v419_v40, %v400_v37  ;;  %v333_v44 = vpop.f32.mrf.mxu0 }
  0xd2   :  { %v352_v45 = vpop.f32.mrf.mxu1 }
  0xd3   :  { %448 = vst.msk [vmem:[%s936_s6] sm:$0xf] %vm447_vm2, %v443_v41  ;;  %v428_v47 = vmax.f32 %v358_v42, %v420_v43  ;;  %v353_v50 = vadd.f32 %v352_v45, %v333_v44 }
  0xd5   :  { %v436_v49 = vadd.f32 %v624_v30, %v428_v47  ;;  %v359_v56 = vmax.f32 %v289_v52, %v353_v50 }
  0xd7   :  { %v403_v51 = vpop.f32.mrf.mxu2  ;;  %v440_v53 = vmax.f32 %v436_v49, 0.0 }
  0xd8   :  { %v422_v54 = vpop.f32.mrf.mxu3 }
  0xd9   :  { %v444_v55 = vpack.c.bf16 %v440_v53, %v440_v53  ;;  %v423_v57 = vadd.f32 %v422_v54, %v403_v51  ;;  %v335_v61 = vpop.f32.mrf.mxu0 }
  0xda   :  { %v354_v58 = vpop.f32.mrf.mxu1 }
  0xdb   :  { %449 = vst.msk [vmem:[%s936_s6 + $0x4] sm:$0xf] %vm447_vm2, %v444_v55  ;;  %v429_v60 = vmax.f32 %v359_v56, %v423_v57  ;;  %v355_v0 = vadd.f32 %v354_v58, %v335_v61 }
  0xdd   :  { %v437_v63 = vadd.f32 %v624_v30, %v429_v60  ;;  %v360_v6 = vmax.f32 %v290_v1, %v355_v0 }
  0xdf   :  { %v441_v2 = vmax.f32 %v437_v63, 0.0  ;;  %v405_v3 = vpop.f32.mrf.mxu2 }
  0xe0   :  { %v424_v4 = vpop.f32.mrf.mxu3 }
  0xe1   :  { %v445_v5 = vpack.c.bf16 %v441_v2, %v441_v2  ;;  %v425_v7 = vadd.f32 %v424_v4, %v405_v3 }
  0xe3   :  { %450 = vst.msk [vmem:[%s936_s6 + $0x8] sm:$0xf] %vm447_vm2, %v445_v5  ;;  %v430_v8 = vmax.f32 %v360_v6, %v425_v7 }
  0xe5   :  { %v438_v9 = vadd.f32 %v624_v30, %v430_v8 }
  0xe7   :  { %v442_v10 = vmax.f32 %v438_v9, 0.0 }
  0xe9   :  { %v446_v11 = vpack.c.bf16 %v442_v10, %v442_v10 }
  0xeb   :  { %451 = vst.msk [vmem:[%s936_s6 + $0xc] sm:$0xf] %vm447_vm2, %v446_v11 }

// kernel: simple_mnist_forward.5
= control target key start
LH: loop header
LB: loop body
LE: loop exit
PB: predicated region body
PF: predicated region fallthrough
CT: control target
= control target key end

     0   :  { %s589_s0 = inlined_call_operand.vmem [shape: bf16[2,320], index: 0, kind: input, shape index: {}]   ;;  %s590_s1 = inlined_call_operand.vmem [shape: bf16[320,50], index: 1, kind: input, shape index: {}]   ;;  %s591_s2 = inlined_call_operand.vmem [shape: f32[1,50], index: 2, kind: input, shape index: {}]   ;;  %s592_s3 = inlined_call_operand.vmem [shape: bf16[50,10], index: 3, kind: input, shape index: {}]   ;;  %s593_s4 = inlined_call_operand.vmem [shape: f32[1,10], index: 4, kind: input, shape index: {}]   ;;  %s594_s5 = inlined_call_operand.hbm [shape: f32[2,10], index: 5, kind: output, shape index: {}]  }
   0x1   :  { %v422_v0 = vld [vmem:[%s590_s1 + $0x38] sm:$0xff]  ;;  %v421_v3 = vld [vmem:[%s590_s1 + $0x30] sm:$0xff]  ;;  %v22_v6 = vld [vmem:[%s589_s0] sm:$0x7] }
   0x2   :  { %v430_v1 = vld [vmem:[%s590_s1 + $0x78] sm:$0xff]  ;;  %197 = vmatpush.bf16.msra.mxu0 %v422_v0  ;;  %v429_v4 = vld [vmem:[%s590_s1 + $0x70] sm:$0xff]  ;;  %v420_v7 = vld [vmem:[%s590_s1 + $0x28] sm:$0xff]  ;;  %68 = vst [vmem:[#allocation1] ss:$9 sm:$0xff] %v22_v6 }
   0x3   :  { %v434_v2 = vld [vmem:[%s590_s1 + $0x98] sm:$0xff]  ;;  %210 = vmatpush.bf16.msra.mxu1 %v430_v1  ;;  %v433_v5 = vld [vmem:[%s590_s1 + $0x90] sm:$0xff]  ;;  %v428_v8 = vld [vmem:[%s590_s1 + $0x68] sm:$0xff] }
   0x4   :  { %227 = vmatpush.bf16.msra.mxu2 %v434_v2  ;;  %v432_v9 = vld [vmem:[%s590_s1 + $0x88] sm:$0xff] }
   0x6   :  { %198 = vmatpush.bf16.msra.mxu0 %v421_v3 }
   0x7   :  { %211 = vmatpush.bf16.msra.mxu1 %v429_v4 }
   0x8   :  { %228 = vmatpush.bf16.msra.mxu2 %v433_v5 }
   0x9   :  { %10 = vsyncpa [#allocation3], 0  ;;  %v419_v10 = vld [vmem:[%s590_s1 + $0x20] sm:$0xff]  ;;  %v418_v13 = vld [vmem:[%s590_s1 + $0x18] sm:$0xff]  ;;  %vm194_vm0 = vcmask 523264   ;;  %vm274_vm1 = vcmask 1040384  }
   0xa   :  { %199 = vmatpush.bf16.msra.mxu0 %v420_v7  ;;  %v427_v11 = vld [vmem:[%s590_s1 + $0x60] sm:$0xff]  ;;  %v426_v14 = vld [vmem:[%s590_s1 + $0x58] sm:$0xff]  ;;  %v417_v16 = vld [vmem:[%s590_s1 + $0x10] sm:$0xff]  ;;  %vm270_vm2 = vcmask 408576   ;;  %vm291_vm3 = vcmask 74752   ;;  %s312_s20 = sshll.u32 %s594_s5, 4  ;;  %s313_s20 = int_to_ptr.hbm [resolvable:$true] %s312_s20 }
   0xb   :  { %212 = vmatpush.bf16.msra.mxu1 %v428_v8  ;;  %v431_v12 = vld [vmem:[%s590_s1 + $0x80] sm:$0xff]  ;;  %v71_v15 = vld [vmem:[#allocation1 + $0x12] sm:$0xff]  ;;  %v416_v18 = vld [vmem:[%s590_s1 + $0x8] sm:$0xff] }
   0xc   :  { %229 = vmatpush.bf16.msra.mxu2 %v432_v9  ;;  %v425_v17 = vld [vmem:[%s590_s1 + $0x50] sm:$0xff]  ;;  %v424_v19 = vld [vmem:[%s590_s1 + $0x48] sm:$0xff]  ;;  %v415_v20 = vld [vmem:[%s590_s1] sm:$0xff] }
   0xd   :  { %v423_v21 = vld [vmem:[%s590_s1 + $0x40] sm:$0xff]  ;;  %v70_v23 = vld [vmem:[#allocation1 + $0x9] sm:$0xff]  ;;  %v244_v24 = vld [vmem:[%s592_s3 + $0x18] sm:$0x1] }
   0xe   :  { %200 = vmatpush.bf16.msra.mxu0 %v419_v10  ;;  %v69_v22 = vld [vmem:[#allocation1] sm:$0xff]  ;;  %v262_v25 = vunpack.c.l.b16 %v244_v24  ;;  %v437_v28 = vld [vmem:[%s592_s3 + $0x10] sm:$0xff]  ;;  %v436_v29 = vld [vmem:[%s592_s3 + $0x8] sm:$0xff] }
   0xf   :  { %213 = vmatpush.bf16.msra.mxu1 %v427_v11  ;;  %v435_v30 = vld [vmem:[%s592_s3] sm:$0xff] }
  0x10   :  { %230 = vmatpush.bf16.msra.mxu2 %v431_v12  ;;  %v266_v26 = vpack.c.b16 %v262_v25, %v262_v25  ;;  %v439_v32 = vld [vmem:[%s591_s2] ss:$0 sm:$0xff]  ;;  %s471_s2 = smov [#allocation2]  }
  0x11   :  { %v440_v43 = vld [vmem:[%s593_s4] ss:$0 sm:$0xff]  ;;  %s310_s4 = sshll.u32 %s471_s2, 4  ;;  %s311_s4 = int_to_ptr.vmem [resolvable:$true] %s310_s4 }
  0x12   :  { %201 = vmatpush.bf16.msra.mxu0 %v418_v13  ;;  %v276_v27 = vsel %vm274_vm1, %v266_v26, 0 }
  0x13   :  { %214 = vmatpush.bf16.msra.mxu1 %v426_v14  ;;  %401 = vmatmul.msk.bf16.vlgmr.msra.gmra.mxu2 %vm194_vm0, %v71_v15 }
  0x14   :  { %282 = vmatpush.bf16.msra.mxu3 %v276_v27 }
  0x16   :  { %202 = vmatpush.bf16.msra.mxu0 %v417_v16 }
  0x17   :  { %215 = vmatpush.bf16.msra.mxu1 %v425_v17 }
  0x18   :  { %283 = vmatpush.bf16.msra.mxu3 %v437_v28 }
  0x1a   :  { %203 = vmatpush.bf16.msra.mxu0 %v416_v18 }
  0x1b   :  { %216 = vmatpush.bf16.msra.mxu1 %v424_v19 }
  0x1c   :  { %284 = vmatpush.bf16.msra.mxu3 %v436_v29 }
  0x1e   :  { %204 = vmatpush.bf16.msra.mxu0 %v415_v20 }
  0x1f   :  { %217 = vmatpush.bf16.msra.mxu1 %v423_v21 }
  0x20   :  { %285 = vmatpush.bf16.msra.mxu3 %v435_v30 }
  0x21   :  { %205 = vmatmul.bf16.vlgmr.msra.gmra.mxu0 %v69_v22 }
  0x22   :  { %218 = vmatmul.bf16.vlgmr.msra.gmra.mxu1 %v70_v23 }
  0x96   :  { %v232_v31 = vpop.f32.mrf.mxu2 }
  0x9e   :  { %v206_v33 = vpop.f32.mrf.mxu0  ;;  %v234_v36 = vpop.f32.mrf.mxu2 }
  0x9f   :  { %v219_v34 = vpop.f32.mrf.mxu1  ;;  %v207_v35 = vadd.f32 %v439_v32, %v206_v33 }
  0xa1   :  { %v220_v37 = vadd.f32 %v219_v34, %v207_v35 }
  0xa3   :  { %v233_v38 = vadd.f32 %v232_v31, %v220_v37 }
  0xa5   :  { %v236_v39 = vmax.f32 %v233_v38, 0.0 }
  0xa6   :  { %v208_v40 = vpop.f32.mrf.mxu0 }
  0xa7   :  { %v221_v41 = vpop.f32.mrf.mxu1  ;;  %v237_v42 = vpack.c.bf16 %v236_v39, %v236_v39 }
  0xa9   :  { %414 = vmatmul.msk.bf16.vlgmr.msra.gmra.mxu3 %vm270_vm2, %v237_v42 }
 0x12c   :  { %v287_v44 = vpop.f32.mrf.mxu3 }
 0x12d   :  { %v288_v45 = vadd.f32 %v440_v43, %v287_v44 }
 0x12f   :  { %v292_v46 = vsel %vm291_vm3, %v288_v45, -inf }
 0x130   :  { %293 = vmax.xlane.f32.xlu0 %v292_v46 }
 0x134   :  { %v289_v47 = vpop.f32.mrf.mxu3 }
 0x1a3   :  { %v294_v48 = vpop.xlane.xlu0 %293 }
 0x1a4   :  { %v295_v49 = vsub.f32 %v288_v45, %v294_v48 }
 0x1a6   :  { %v296_v50 = vmul.f32 1.442695, %v295_v49 }
 0x1a8   :  { %441 = vpow2.f32 %v296_v50 }
 0x1ae   :  { %v442_v51 = vpop.eup %441 }
 0x1af   :  { %v298_v52 = vsel %vm291_vm3, %v442_v51, 0.0 }
 0x1b0   :  { %299 = vadd.xlane.f32.xlu0 %v298_v52 }
 0x223   :  { %v300_v53 = vpop.xlane.xlu0 %299 }
 0x224   :  { %443 = vlog2.f32 %v300_v53 }
 0x22a   :  { %v444_v54 = vpop.eup %443 }
 0x22b   :  { %v302_v55 = vmul.f32 0.6931472, %v444_v54 }
 0x22d   :  { %v303_v56 = vsub.f32 %v295_v49, %v302_v55 }
 0x22f   :  { %304 = vst.msk [vmem:[#allocation2] sm:$0x3] %vm291_vm3, %v303_v56 }
 0x230   :  { %315 = dma.vmem_to_hbm [thread:$0]  %s311_s4, 32, %s313_s20, [#allocation3]  }
 0x231   :  { %469 = dma.done.wait [#allocation3], 32  }
 0x232   :  { %470 = vsyncadd [#allocation3], 4294967264 }
 0x233   :  { %320 = vsyncpa [#allocation3], 1 }

</bundles_post_ra>
